<compile_context>
chip_gen: v7x
topology: tpu7x:2x2x1
jax: 0.10.0
libtpu: 0.0.40
codegen_flags: <defaults>
</compile_context>

<pallas_src>
import functools

import jax
import jax.numpy as jnp
import numpy as np
from jax import lax
from jax.experimental import pallas as pl
from jax.experimental.pallas import tpu as pltpu


_PAD_CODE = 1   # int8 code that decodes to sign = 0 (conv zero-padding / layout slack)


# ----------------------------- shared quantizers -----------------------------

def _quant4(x):
    # QuantSign(x, 4): 4-bit symmetric quantization (round-half-even, as jnp.round).
    return jnp.clip(jnp.round(x * 8.0) * 0.125, -1.0, 1.0)


def _encode_int8(x):
    """Pack sign(x) and the 4-bit code of x into one int8.

    enc = 4*clip(round(8x), -8, 8) + 2*(x >= 0)          (always even, range [-32, 34])
    In-kernel decode (exact):
        qf   = floor(enc/4)          -> clip(round(8x), -8, 8), so quant4(x) = qf/8
        sign = enc - 4*qf - 1        -> +1 / -1;  the (odd) pad code 1 decodes to 0.
    """
    q = jnp.clip(jnp.round(x * 8.0), -8.0, 8.0)
    s = jnp.where(x >= 0.0, 2.0, 0.0)
    return (4.0 * q + s).astype(jnp.int8)


# ------------------------------- Pallas kernel --------------------------------

def _building_block_kernel(x_ref, w3_ref, w1_ref, p1_ref, p2_ref, out_ref, col_ref, *,
                           stride, Ho, Hq, Wq, Cin, Cout):
    """Whole BuildingBlock forward for one image, entirely in VMEM.

    x_ref : (R, Cin)      int8  phase-flattened, pad-coded input (see _encode_int8)
    w3_ref: (9*Cin, Cin)  bf16  +-1 sign weights of the 3x3 conv, K-concatenated tap-major
    w1_ref: (Cin, Cout)   bf16  +-1 sign weights of the 1x1 conv
    p1/p2 : (8, C)        f32   [alpha*bn_s, bn_b + b0, slope, b1, sbn_s, sbn_b, 0, 0]
    out   : (Ho*Wq, Cout) bf16  "wide-row" output (extra Wq-Wo cols dropped on host)
    col   : (Ho*Wq, 9*Cin) bf16 VMEM scratch: in-kernel im2col of the binarized input
    """
    MW = Ho * Wq

    # -- decode the int8 code once per slab: 4-bit code + {-1, 0, +1} sign (pad -> 0) --
    e = x_ref[...].astype(jnp.float32)                    # (R, Cin)
    qf = jnp.floor(e * 0.25)                              # clip(round(8x), -8, 8), exact
    sgn = (e - 4.0 * qf - 1.0).astype(jnp.bfloat16)       # +-1 (0 at padding), exact in bf16

    # -- in-VMEM im2col (9 shifted row-slice stores) + ONE K=9*Cin MXU matmul --
    for kh in range(3):
        for kw in range(3):
            tap = kh * 3 + kw
            ph = (kh % stride) * stride + (kw % stride)
            start = (ph * Hq + kh // stride) * Wq + kw // stride
            col_ref[:, tap * Cin:(tap + 1) * Cin] = sgn[start:start + MW, :]
    y = jnp.dot(col_ref[...], w3_ref[...], preferred_element_type=jnp.float32)  # (MW, Cin)

    # -- BatchNorm1 (|W| scale folded in) + RPReLU1 --
    p1 = p1_ref[...]
    y = y * p1[0:1] + p1[1:2]                             # alpha3*bn1_s, bn1_b + rprelu1.b0
    y = jnp.where(y > 0.0, y, p1[2:3] * y) + p1[3:4]

    # -- shortcut1: 4-bit quantized input (2x2 average pool when stride == 2) --
    if stride == 1:
        sc1 = qf[Wq + 1:Wq + 1 + MW, :] * 0.125
    else:
        acc = None
        for di in range(2):
            for dj in range(2):
                ph = ((di + 1) % 2) * 2 + (dj + 1) % 2
                start = (ph * Hq + (di + 1) // 2) * Wq + (dj + 1) // 2
                q = qf[start:start + MW, :]
                acc = q if acc is None else acc + q
        sc1 = acc * (0.125 * 0.25)                        # (sum of 4-bit codes)/32, exact

    t = (y + sc1) * p1[4:5] + p1[5:6]                     # shift BatchNorm 1

    # -- stage 2: re-binarize + 1x1 binary conv + BatchNorm2 + RPReLU2 --
    tb = jnp.where(t >= 0.0, 1.0, -1.0).astype(jnp.bfloat16)
    z = jnp.dot(tb, w1_ref[...], preferred_element_type=jnp.float32)   # (MW, Cout)
    p2 = p2_ref[...]
    z = z * p2[0:1] + p2[1:2]
    z = jnp.where(z > 0.0, z, p2[2:3] * z) + p2[3:4]

    # -- shortcut2: 4-bit quantized t, channel-duplicated when Cout == 2*Cin --
    q4 = _quant4(t)
    if Cout == Cin:
        out_ref[...] = ((z + q4) * p2[4:5] + p2[5:6]).astype(out_ref.dtype)
    else:
        # torch.cat((x, x), dim=1) expressed as two lane-slice stores (no concat/matmul)
        out_ref[:, :Cin] = ((z[:, :Cin] + q4) * p2[4:5, :Cin]
                            + p2[5:6, :Cin]).astype(out_ref.dtype)
        out_ref[:, Cin:] = ((z[:, Cin:] + q4) * p2[4:5, Cin:]
                            + p2[5:6, Cin:]).astype(out_ref.dtype)


# --------------------------------- wrapper ------------------------------------

def _vmem_limit_bytes():
    # v5e/v6e: 128 MiB physical VMEM -> allow a large working set; v7x: 64 MiB -> tighter.
    try:
        cap = pltpu.get_tpu_info().vmem_capacity_bytes
    except Exception:
        cap = 64 * 1024 * 1024
    return int(min(cap - 16 * 1024 * 1024, 96 * 1024 * 1024))


@functools.partial(jax.jit, static_argnames=("stride", "inp", "oup"))
def building_block_forward(x_nchw, params, stride, inp, oup):
    N, C, H, W = x_nchw.shape
    assert C == inp and oup in (inp, 2 * inp)
    assert H % stride == 0 and W % stride == 0            # AvgPool2d(2,2) shortcut requirement

    Hp, Wp = H + 2, W + 2
    Ho, Wo = (Hp - 3) // stride + 1, (Wp - 3) // stride + 1
    Hq, Wq = -(-Hp // stride), -(-Wp // stride)
    P = stride * stride
    MW = Ho * Wq

    # int8 sign+4-bit encoding: 4x less HBM input traffic than f32 and exact for the
    # two quantities the kernel needs.  Padding uses _PAD_CODE (decodes to sign 0, so
    # padded conv taps contribute nothing).
    x = jnp.transpose(x_nchw, (0, 2, 3, 1)).astype(jnp.float32)       # NHWC
    enc = _encode_int8(x)
    encp = jnp.pad(enc, ((0, 0), (1, 1), (1, 1), (0, 0)), constant_values=_PAD_CODE)

    # Phase (space-to-batch) decomposition + flatten (now int8, so cheap): every conv /
    # pool tap becomes a contiguous row slice inside the kernel (no HBM im2col).
    # TODO(synk): in a full network keep activations in this wide-row int8 layout
    # between blocks so these host-side layout passes (and the output trim / NCHW
    # transpose below) disappear entirely.
    if stride == 1:
        xflat = encp.reshape(N, Hp * Wp, C)
    else:
        phases = []
        for a in range(stride):
            for b in range(stride):
                ph = encp[:, a::stride, b::stride, :]
                ph = jnp.pad(ph, ((0, 0), (0, Hq - ph.shape[1]), (0, Wq - ph.shape[2]), (0, 0)),
                             constant_values=_PAD_CODE)
                phases.append(ph)
        xflat = jnp.concatenate(phases, axis=1).reshape(N, P * Hq * Wq, C)
    R = -(-(P * Hq * Wq + 2) // 8) * 8                    # slack rows for the edge taps
    xflat = jnp.pad(xflat, ((0, 0), (0, R - xflat.shape[1]), (0, 0)),
                    constant_values=_PAD_CODE)

    kernel = functools.partial(_building_block_kernel, stride=stride,
                               Ho=Ho, Hq=Hq, Wq=Wq, Cin=inp, Cout=oup)

    # TODO(synk): for ImageNet-scale feature maps add an MW row-tile grid axis (halo
    # re-read) so the working set fits v7x's 64 MiB VMEM, fold several images per grid
    # step for the small late-layer maps, and switch the +-1 matmul operands to int8 on
    # v5e/v6e (fp8 on v7x) behind a pltpu.get_tpu_info() gate -- bf16 is the portable
    # exact choice used here.
    out = pl.pallas_call(
        kernel,
        out_shape=jax.ShapeDtypeStruct((N, MW, oup), jnp.bfloat16),
        grid=(N,),
        in_specs=[
            pl.BlockSpec((None, R, inp), lambda n: (n, 0, 0)),     # per-image int8 input
            pl.BlockSpec((9 * inp, inp), lambda n: (0, 0)),        # fused 3x3 sign weights
            pl.BlockSpec((inp, oup), lambda n: (0, 0)),            # 1x1 sign weights
            pl.BlockSpec((8, inp), lambda n: (0, 0)),              # folded stage-1 params
            pl.BlockSpec((8, oup), lambda n: (0, 0)),              # folded stage-2 params
        ],
        out_specs=pl.BlockSpec((None, MW, oup), lambda n: (n, 0, 0)),
        scratch_shapes=[pltpu.VMEM((MW, 9 * inp), jnp.bfloat16)],  # in-kernel im2col
        compiler_params=pltpu.CompilerParams(
            dimension_semantics=("parallel",),    # batch shards across TCs (v7x megacore)
            vmem_limit_bytes=_vmem_limit_bytes(),
        ),
    )(xflat, params["w3"], params["w1"], params["p1"], params["p2"])

    out = out.reshape(N, Ho, Wq, oup)[:, :, :Wo, :]       # drop the Wq - Wo padded columns
    return jnp.transpose(out, (0, 3, 1, 2))               # back to NCHW (bf16)


# --------------------------- parameter setup (glue) ---------------------------

def _fold_bn(key, c):
    kw, kb, km, kv = jax.random.split(key, 4)
    weight = 1.0 + 0.1 * jax.random.normal(kw, (c,), jnp.float32)
    bias = 0.1 * jax.random.normal(kb, (c,), jnp.float32)
    mean = 0.1 * jax.random.normal(km, (c,), jnp.float32)
    var = 1.0 + 0.1 * jax.random.uniform(kv, (c,), jnp.float32)
    scale = weight / jnp.sqrt(var + 1e-5)
    return scale, bias - mean * scale


def init_params(key, inp, oup):
    assert oup in (inp, 2 * inp)
    ks = jax.random.split(key, 12)
    w3 = 0.1 * jax.random.normal(ks[0], (inp, inp, 3, 3), jnp.float32)   # torch OIHW
    w1 = 0.1 * jax.random.normal(ks[1], (oup, inp, 1, 1), jnp.float32)
    alpha3 = jnp.mean(jnp.abs(w3), axis=(1, 2, 3))        # per-out-channel |W| means
    alpha1 = jnp.mean(jnp.abs(w1), axis=(1, 2, 3))
    w3_hwio = jnp.transpose(jnp.where(w3 >= 0.0, 1.0, -1.0), (2, 3, 1, 0))  # (3,3,Ci,Co) +-1
    w1_hwio = jnp.transpose(jnp.where(w1 >= 0.0, 1.0, -1.0), (2, 3, 1, 0))  # (1,1,Ci,Co) +-1

    bn1_s, bn1_b = _fold_bn(ks[2], inp)
    bn2_s, bn2_b = _fold_bn(ks[3], oup)
    sbn1_s, sbn1_b = _fold_bn(ks[4], inp)
    sbn2_s, sbn2_b = _fold_bn(ks[5], oup)
    r1_b0 = 0.05 * jax.random.normal(ks[6], (inp,), jnp.float32)
    r1_sl = 0.25 + 0.05 * jax.random.normal(ks[7], (inp,), jnp.float32)
    r1_b1 = 0.05 * jax.random.normal(ks[8], (inp,), jnp.float32)
    r2_b0 = 0.05 * jax.random.normal(ks[9], (oup,), jnp.float32)
    r2_sl = 0.25 + 0.05 * jax.random.normal(ks[10], (oup,), jnp.float32)
    r2_b1 = 0.05 * jax.random.normal(ks[11], (oup,), jnp.float32)

    zi, zo = jnp.zeros((inp,), jnp.float32), jnp.zeros((oup,), jnp.float32)
    # Folded epilogue params: scale = alpha * bn_scale, bias = bn_bias + rprelu.b0
    p1 = jnp.stack([alpha3 * bn1_s, bn1_b + r1_b0, r1_sl, r1_b1, sbn1_s, sbn1_b, zi, zi])
    p2 = jnp.stack([alpha1 * bn2_s, bn2_b + r2_b0, r2_sl, r2_b1, sbn2_s, sbn2_b, zo, zo])

    # Kernel weights: pure +-1 sign weights in bf16 (lossless); alpha folded into p*[0].
    # 3x3 weights are K-concatenated tap-major to match the in-kernel im2col scratch:
    # row (kh*3+kw)*Cin + ci  <->  scratch column (kh*3+kw)*Cin + ci.
    w3_k = w3_hwio.reshape(9 * inp, inp).astype(jnp.bfloat16)
    w1_k = w1_hwio.reshape(inp, oup).astype(jnp.bfloat16)

    return dict(w3=w3_k, w1=w1_k, p1=p1, p2=p2, w3_hwio=w3_hwio, w1_hwio=w1_hwio)


# ---------------------------- pure-JAX reference -------------------------------

def reference_forward(x_nchw, params, stride, inp, oup):
    x = jnp.transpose(x_nchw, (0, 2, 3, 1)).astype(jnp.float32)
    sign1 = lambda v: jnp.where(v >= 0.0, 1.0, -1.0)
    p1, p2 = params["p1"], params["p2"]

    ysum = lax.conv_general_dilated(sign1(x), params["w3_hwio"], (stride, stride),
                                    ((1, 1), (1, 1)),
                                    dimension_numbers=("NHWC", "HWIO", "NHWC"))
    y = ysum * p1[0] + p1[1]
    y = jnp.where(y > 0.0, y, p1[2] * y) + p1[3]

    sc1 = _quant4(x)
    if stride == 2:
        N, H, W, C = x.shape
        sc1 = sc1.reshape(N, H // 2, 2, W // 2, 2, C).mean(axis=(2, 4))
    t = (y + sc1) * p1[4] + p1[5]

    zsum = lax.conv_general_dilated(sign1(t), params["w1_hwio"], (1, 1), ((0, 0), (0, 0)),
                                    dimension_numbers=("NHWC", "HWIO", "NHWC"))
    z = zsum * p2[0] + p2[1]
    z = jnp.where(z > 0.0, z, p2[2] * z) + p2[3]

    sc2 = _quant4(t)
    if oup == 2 * inp:
        sc2 = jnp.concatenate([sc2, sc2], axis=-1)
    u = (z + sc2) * p2[4] + p2[5]
    return jnp.transpose(u, (0, 3, 1, 2))


# ----------------------------------- main --------------------------------------

if __name__ == "__main__":
    key = jax.random.PRNGKey(0)
    configs = [
        (8, 16, 2),   # downsample: avg-pool shortcut + channel-doubling (cat) shortcut
        (8, 8, 1),    # identity shortcuts
    ]
    for inp, oup, stride in configs:
        kpar, kdat = jax.random.split(jax.random.fold_in(key, stride * 100 + oup))
        params = init_params(kpar, inp, oup)
        x = jax.random.normal(kdat, (2, inp, 16, 16), jnp.float32)   # NCHW input
        out = jax.block_until_ready(building_block_forward(x, params, stride, inp, oup))
        ref = reference_forward(x, params, stride, inp, oup)
        # Kernel math is bit-exact in f32 up to the final bf16 output cast -> ~2^-9 rel.
        np.testing.assert_allclose(np.asarray(out.astype(jnp.float32)), np.asarray(ref),
                                   rtol=1e-2, atol=1e-2)

    print("KERNEL_OK")
</pallas_src>

<mosaic_0001>
module attributes {stable_mosaic.version = 11 : i64} {
  func.func @_building_block_kernel(%arg0: i32, %arg1: memref<1x328x8xi8, #tpu.memory_space<vmem>>, %arg2: memref<72x8xbf16, #tpu.memory_space<vmem>>, %arg3: memref<8x16xbf16, #tpu.memory_space<vmem>>, %arg4: memref<8x8xf32, #tpu.memory_space<vmem>>, %arg5: memref<8x16xf32, #tpu.memory_space<vmem>>, %arg6: memref<1x72x16xbf16, #tpu.memory_space<vmem>>, %arg7: memref<72x72xbf16, #tpu.memory_space<vmem>>) attributes {dimension_semantics = [#tpu.dimension_semantics<parallel>], iteration_bounds = array<i64: 2>, scalar_prefetch = 0 : i64, scratch_operands = 1 : i64, tpu.core_type = #tpu.core_type<tc>, window_params = [{transform_indices = @transform_0, window_bounds = array<i64: 1, 328, 8>}, {pipeline_mode = #tpu.pipeline_mode<synchronous>, transform_indices = @transform_1, window_bounds = array<i64: 72, 8>}, {pipeline_mode = #tpu.pipeline_mode<synchronous>, transform_indices = @transform_2, window_bounds = array<i64: 8, 16>}, {pipeline_mode = #tpu.pipeline_mode<synchronous>, transform_indices = @transform_3, window_bounds = array<i64: 8, 8>}, {pipeline_mode = #tpu.pipeline_mode<synchronous>, transform_indices = @transform_4, window_bounds = array<i64: 8, 16>}, {transform_indices = @transform_5, window_bounds = array<i64: 1, 72, 16>}]} {
    %c0 = arith.constant 0 : index
    %c0_0 = arith.constant 0 : index
    %c0_1 = arith.constant 0 : index
    %0 = vector.load %arg1[%c0, %c0_0, %c0_1] : memref<1x328x8xi8, #tpu.memory_space<vmem>>, vector<1x328x8xi8>
    %1 = vector.shape_cast %0 : vector<1x328x8xi8> to vector<328x8xi8>
    %2 = arith.sitofp %1 : vector<328x8xi8> to vector<328x8xf32>
    %cst = arith.constant 2.500000e-01 : f32
    %3 = vector.broadcast %cst : f32 to vector<328x8xf32>
    %4 = arith.mulf %2, %3 : vector<328x8xf32>
    %5 = math.floor %4 : vector<328x8xf32>
    %cst_2 = arith.constant 4.000000e+00 : f32
    %6 = vector.broadcast %cst_2 : f32 to vector<328x8xf32>
    %7 = arith.mulf %6, %5 : vector<328x8xf32>
    %8 = arith.subf %2, %7 : vector<328x8xf32>
    %cst_3 = arith.constant 1.000000e+00 : f32
    %9 = vector.broadcast %cst_3 : f32 to vector<328x8xf32>
    %10 = arith.subf %8, %9 : vector<328x8xf32>
    %11 = arith.truncf %10 : vector<328x8xf32> to vector<328x8xbf16>
    %12 = vector.extract_strided_slice %11 {offsets = [0, 0], sizes = [72, 8], strides = [1, 1]} : vector<328x8xbf16> to vector<72x8xbf16>
    %c0_4 = arith.constant 0 : index
    %c0_5 = arith.constant 0 : index
    %13 = vector.load %arg7[%c0_4, %c0_5] : memref<72x72xbf16, #tpu.memory_space<vmem>>, vector<72x8xbf16>
    tpu.vector_store %arg7[%c0_4, %c0_5], %12 {strides = array<i32>} : memref<72x72xbf16, #tpu.memory_space<vmem>>, vector<72x8xbf16>,
    %14 = vector.extract_strided_slice %11 {offsets = [81, 0], sizes = [72, 8], strides = [1, 1]} : vector<328x8xbf16> to vector<72x8xbf16>
    %c0_6 = arith.constant 0 : index
    %c8 = arith.constant 8 : index
    %15 = vector.load %arg7[%c0_6, %c8] : memref<72x72xbf16, #tpu.memory_space<vmem>>, vector<72x8xbf16>
    tpu.vector_store %arg7[%c0_6, %c8], %14 {strides = array<i32>} : memref<72x72xbf16, #tpu.memory_space<vmem>>, vector<72x8xbf16>,
    %16 = vector.extract_strided_slice %11 {offsets = [1, 0], sizes = [72, 8], strides = [1, 1]} : vector<328x8xbf16> to vector<72x8xbf16>
    %c0_7 = arith.constant 0 : index
    %c16 = arith.constant 16 : index
    %17 = vector.load %arg7[%c0_7, %c16] : memref<72x72xbf16, #tpu.memory_space<vmem>>, vector<72x8xbf16>
    tpu.vector_store %arg7[%c0_7, %c16], %16 {strides = array<i32>} : memref<72x72xbf16, #tpu.memory_space<vmem>>, vector<72x8xbf16>,
    %18 = vector.extract_strided_slice %11 {offsets = [162, 0], sizes = [72, 8], strides = [1, 1]} : vector<328x8xbf16> to vector<72x8xbf16>
    %c0_8 = arith.constant 0 : index
    %c24 = arith.constant 24 : index
    %19 = vector.load %arg7[%c0_8, %c24] : memref<72x72xbf16, #tpu.memory_space<vmem>>, vector<72x8xbf16>
    tpu.vector_store %arg7[%c0_8, %c24], %18 {strides = array<i32>} : memref<72x72xbf16, #tpu.memory_space<vmem>>, vector<72x8xbf16>,
    %20 = vector.extract_strided_slice %11 {offsets = [243, 0], sizes = [72, 8], strides = [1, 1]} : vector<328x8xbf16> to vector<72x8xbf16>
    %c0_9 = arith.constant 0 : index
    %c32 = arith.constant 32 : index
    %21 = vector.load %arg7[%c0_9, %c32] : memref<72x72xbf16, #tpu.memory_space<vmem>>, vector<72x8xbf16>
    tpu.vector_store %arg7[%c0_9, %c32], %20 {strides = array<i32>} : memref<72x72xbf16, #tpu.memory_space<vmem>>, vector<72x8xbf16>,
    %22 = vector.extract_strided_slice %11 {offsets = [163, 0], sizes = [72, 8], strides = [1, 1]} : vector<328x8xbf16> to vector<72x8xbf16>
    %c0_10 = arith.constant 0 : index
    %c40 = arith.constant 40 : index
    %23 = vector.load %arg7[%c0_10, %c40] : memref<72x72xbf16, #tpu.memory_space<vmem>>, vector<72x8xbf16>
    tpu.vector_store %arg7[%c0_10, %c40], %22 {strides = array<i32>} : memref<72x72xbf16, #tpu.memory_space<vmem>>, vector<72x8xbf16>,
    %24 = vector.extract_strided_slice %11 {offsets = [9, 0], sizes = [72, 8], strides = [1, 1]} : vector<328x8xbf16> to vector<72x8xbf16>
    %c0_11 = arith.constant 0 : index
    %c48 = arith.constant 48 : index
    %25 = vector.load %arg7[%c0_11, %c48] : memref<72x72xbf16, #tpu.memory_space<vmem>>, vector<72x8xbf16>
    tpu.vector_store %arg7[%c0_11, %c48], %24 {strides = array<i32>} : memref<72x72xbf16, #tpu.memory_space<vmem>>, vector<72x8xbf16>,
    %26 = vector.extract_strided_slice %11 {offsets = [90, 0], sizes = [72, 8], strides = [1, 1]} : vector<328x8xbf16> to vector<72x8xbf16>
    %c0_12 = arith.constant 0 : index
    %c56 = arith.constant 56 : index
    %27 = vector.load %arg7[%c0_12, %c56] : memref<72x72xbf16, #tpu.memory_space<vmem>>, vector<72x8xbf16>
    tpu.vector_store %arg7[%c0_12, %c56], %26 {strides = array<i32>} : memref<72x72xbf16, #tpu.memory_space<vmem>>, vector<72x8xbf16>,
    %28 = vector.extract_strided_slice %11 {offsets = [10, 0], sizes = [72, 8], strides = [1, 1]} : vector<328x8xbf16> to vector<72x8xbf16>
    %c0_13 = arith.constant 0 : index
    %c64 = arith.constant 64 : index
    %29 = vector.load %arg7[%c0_13, %c64] : memref<72x72xbf16, #tpu.memory_space<vmem>>, vector<72x8xbf16>
    tpu.vector_store %arg7[%c0_13, %c64], %28 {strides = array<i32>} : memref<72x72xbf16, #tpu.memory_space<vmem>>, vector<72x8xbf16>,
    %c0_14 = arith.constant 0 : index
    %c0_15 = arith.constant 0 : index
    %30 = vector.load %arg7[%c0_14, %c0_15] : memref<72x72xbf16, #tpu.memory_space<vmem>>, vector<72x72xbf16>
    %c0_16 = arith.constant 0 : index
    %c0_17 = arith.constant 0 : index
    %31 = vector.load %arg2[%c0_16, %c0_17] : memref<72x8xbf16, #tpu.memory_space<vmem>>, vector<72x8xbf16>
    %cst_18 = arith.constant dense<0.000000e+00> : vector<72x8xf32>
    %32 = tpu.matmul %30, %31, %cst_18 {dimension_numbers = #tpu.dot_dimension_numbers<[1], [0], [0], [1], [0, 0, 1, 1], [], []>} : vector<72x72xbf16>, vector<72x8xbf16>, vector<72x8xf32> -> vector<72x8xf32>
    %c0_19 = arith.constant 0 : index
    %c0_20 = arith.constant 0 : index
    %33 = vector.load %arg4[%c0_19, %c0_20] : memref<8x8xf32, #tpu.memory_space<vmem>>, vector<8x8xf32>
    %34 = vector.extract_strided_slice %33 {offsets = [0, 0], sizes = [1, 8], strides = [1, 1]} : vector<8x8xf32> to vector<1x8xf32>
    %35 = vector.broadcast %34 : vector<1x8xf32> to vector<72x8xf32>
    %36 = arith.mulf %32, %35 : vector<72x8xf32>
    %37 = vector.extract_strided_slice %33 {offsets = [1, 0], sizes = [1, 8], strides = [1, 1]} : vector<8x8xf32> to vector<1x8xf32>
    %38 = vector.broadcast %37 : vector<1x8xf32> to vector<72x8xf32>
    %39 = arith.addf %36, %38 : vector<72x8xf32>
    %cst_21 = arith.constant 0.000000e+00 : f32
    %40 = vector.broadcast %cst_21 : f32 to vector<72x8xf32>
    %41 = arith.cmpf ogt, %39, %40 : vector<72x8xf32>
    %42 = vector.extract_strided_slice %33 {offsets = [2, 0], sizes = [1, 8], strides = [1, 1]} : vector<8x8xf32> to vector<1x8xf32>
    %43 = vector.broadcast %42 : vector<1x8xf32> to vector<72x8xf32>
    %44 = arith.mulf %43, %39 : vector<72x8xf32>
    %45 = arith.select %41, %39, %44 : vector<72x8xi1>, vector<72x8xf32>
    %46 = vector.extract_strided_slice %33 {offsets = [3, 0], sizes = [1, 8], strides = [1, 1]} : vector<8x8xf32> to vector<1x8xf32>
    %47 = vector.broadcast %46 : vector<1x8xf32> to vector<72x8xf32>
    %48 = arith.addf %45, %47 : vector<72x8xf32>
    %49 = vector.extract_strided_slice %5 {offsets = [243, 0], sizes = [72, 8], strides = [1, 1]} : vector<328x8xf32> to vector<72x8xf32>
    %50 = vector.extract_strided_slice %5 {offsets = [163, 0], sizes = [72, 8], strides = [1, 1]} : vector<328x8xf32> to vector<72x8xf32>
    %51 = arith.addf %49, %50 : vector<72x8xf32>
    %52 = vector.extract_strided_slice %5 {offsets = [90, 0], sizes = [72, 8], strides = [1, 1]} : vector<328x8xf32> to vector<72x8xf32>
    %53 = arith.addf %51, %52 : vector<72x8xf32>
    %54 = vector.extract_strided_slice %5 {offsets = [10, 0], sizes = [72, 8], strides = [1, 1]} : vector<328x8xf32> to vector<72x8xf32>
    %55 = arith.addf %53, %54 : vector<72x8xf32>
    %cst_22 = arith.constant 3.125000e-02 : f32
    %56 = vector.broadcast %cst_22 : f32 to vector<72x8xf32>
    %57 = arith.mulf %55, %56 : vector<72x8xf32>
    %58 = arith.addf %48, %57 : vector<72x8xf32>
    %59 = vector.extract_strided_slice %33 {offsets = [4, 0], sizes = [1, 8], strides = [1, 1]} : vector<8x8xf32> to vector<1x8xf32>
    %60 = vector.broadcast %59 : vector<1x8xf32> to vector<72x8xf32>
    %61 = arith.mulf %58, %60 : vector<72x8xf32>
    %62 = vector.extract_strided_slice %33 {offsets = [5, 0], sizes = [1, 8], strides = [1, 1]} : vector<8x8xf32> to vector<1x8xf32>
    %63 = vector.broadcast %62 : vector<1x8xf32> to vector<72x8xf32>
    %64 = arith.addf %61, %63 : vector<72x8xf32>
    %cst_23 = arith.constant 0.000000e+00 : f32
    %65 = vector.broadcast %cst_23 : f32 to vector<72x8xf32>
    %66 = arith.cmpf oge, %64, %65 : vector<72x8xf32>
    %cst_24 = arith.constant 1.000000e+00 : f32
    %cst_25 = arith.constant -1.000000e+00 : f32
    %67 = vector.broadcast %cst_24 : f32 to vector<72x8xf32>
    %68 = vector.broadcast %cst_25 : f32 to vector<72x8xf32>
    %69 = arith.select %66, %67, %68 : vector<72x8xi1>, vector<72x8xf32>
    %70 = arith.truncf %69 : vector<72x8xf32> to vector<72x8xbf16>
    %c0_26 = arith.constant 0 : index
    %c0_27 = arith.constant 0 : index
    %71 = vector.load %arg3[%c0_26, %c0_27] : memref<8x16xbf16, #tpu.memory_space<vmem>>, vector<8x16xbf16>
    %cst_28 = arith.constant dense<0.000000e+00> : vector<72x16xf32>
    %72 = tpu.matmul %70, %71, %cst_28 {dimension_numbers = #tpu.dot_dimension_numbers<[1], [0], [0], [1], [0, 0, 1, 1], [], []>} : vector<72x8xbf16>, vector<8x16xbf16>, vector<72x16xf32> -> vector<72x16xf32>
    %c0_29 = arith.constant 0 : index
    %c0_30 = arith.constant 0 : index
    %73 = vector.load %arg5[%c0_29, %c0_30] : memref<8x16xf32, #tpu.memory_space<vmem>>, vector<8x16xf32>
    %74 = vector.extract_strided_slice %73 {offsets = [0, 0], sizes = [1, 16], strides = [1, 1]} : vector<8x16xf32> to vector<1x16xf32>
    %75 = vector.broadcast %74 : vector<1x16xf32> to vector<72x16xf32>
    %76 = arith.mulf %72, %75 : vector<72x16xf32>
    %77 = vector.extract_strided_slice %73 {offsets = [1, 0], sizes = [1, 16], strides = [1, 1]} : vector<8x16xf32> to vector<1x16xf32>
    %78 = vector.broadcast %77 : vector<1x16xf32> to vector<72x16xf32>
    %79 = arith.addf %76, %78 : vector<72x16xf32>
    %cst_31 = arith.constant 0.000000e+00 : f32
    %80 = vector.broadcast %cst_31 : f32 to vector<72x16xf32>
    %81 = arith.cmpf ogt, %79, %80 : vector<72x16xf32>
    %82 = vector.extract_strided_slice %73 {offsets = [2, 0], sizes = [1, 16], strides = [1, 1]} : vector<8x16xf32> to vector<1x16xf32>
    %83 = vector.broadcast %82 : vector<1x16xf32> to vector<72x16xf32>
    %84 = arith.mulf %83, %79 : vector<72x16xf32>
    %85 = arith.select %81, %79, %84 : vector<72x16xi1>, vector<72x16xf32>
    %86 = vector.extract_strided_slice %73 {offsets = [3, 0], sizes = [1, 16], strides = [1, 1]} : vector<8x16xf32> to vector<1x16xf32>
    %87 = vector.broadcast %86 : vector<1x16xf32> to vector<72x16xf32>
    %88 = arith.addf %85, %87 : vector<72x16xf32>
    %cst_32 = arith.constant 8.000000e+00 : f32
    %89 = vector.broadcast %cst_32 : f32 to vector<72x8xf32>
    %90 = arith.mulf %64, %89 : vector<72x8xf32>
    %91 = math.roundeven %90 : vector<72x8xf32>
    %cst_33 = arith.constant 1.250000e-01 : f32
    %92 = vector.broadcast %cst_33 : f32 to vector<72x8xf32>
    %93 = arith.mulf %91, %92 : vector<72x8xf32>
    %cst_34 = arith.constant -1.000000e+00 : f32
    %cst_35 = arith.constant 1.000000e+00 : f32
    %94 = vector.broadcast %cst_34 : f32 to vector<72x8xf32>
    %95 = arith.maximumf %94, %93 : vector<72x8xf32>
    %96 = vector.broadcast %cst_35 : f32 to vector<72x8xf32>
    %97 = arith.minimumf %96, %95 : vector<72x8xf32>
    %98 = vector.extract_strided_slice %88 {offsets = [0, 0], sizes = [72, 8], strides = [1, 1]} : vector<72x16xf32> to vector<72x8xf32>
    %99 = arith.addf %98, %97 : vector<72x8xf32>
    %100 = vector.extract_strided_slice %73 {offsets = [4, 0], sizes = [1, 8], strides = [1, 1]} : vector<8x16xf32> to vector<1x8xf32>
    %101 = vector.broadcast %100 : vector<1x8xf32> to vector<72x8xf32>
    %102 = arith.mulf %99, %101 : vector<72x8xf32>
    %103 = vector.extract_strided_slice %73 {offsets = [5, 0], sizes = [1, 8], strides = [1, 1]} : vector<8x16xf32> to vector<1x8xf32>
    %104 = vector.broadcast %103 : vector<1x8xf32> to vector<72x8xf32>
    %105 = arith.addf %102, %104 : vector<72x8xf32>
    %106 = arith.truncf %105 : vector<72x8xf32> to vector<72x8xbf16>
    %c0_36 = arith.constant 0 : index
    %c0_37 = arith.constant 0 : index
    %c0_38 = arith.constant 0 : index
    %107 = vector.load %arg6[%c0_36, %c0_37, %c0_38] : memref<1x72x16xbf16, #tpu.memory_space<vmem>>, vector<1x72x8xbf16>
    %108 = vector.shape_cast %107 : vector<1x72x8xbf16> to vector<72x8xbf16>
    %109 = vector.shape_cast %106 : vector<72x8xbf16> to vector<1x72x8xbf16>
    tpu.vector_store %arg6[%c0_36, %c0_37, %c0_38], %109 {strides = array<i32>} : memref<1x72x16xbf16, #tpu.memory_space<vmem>>, vector<1x72x8xbf16>,
    %110 = vector.extract_strided_slice %88 {offsets = [0, 8], sizes = [72, 8], strides = [1, 1]} : vector<72x16xf32> to vector<72x8xf32>
    %111 = arith.addf %110, %97 : vector<72x8xf32>
    %112 = vector.extract_strided_slice %73 {offsets = [4, 8], sizes = [1, 8], strides = [1, 1]} : vector<8x16xf32> to vector<1x8xf32>
    %113 = vector.broadcast %112 : vector<1x8xf32> to vector<72x8xf32>
    %114 = arith.mulf %111, %113 : vector<72x8xf32>
    %115 = vector.extract_strided_slice %73 {offsets = [5, 8], sizes = [1, 8], strides = [1, 1]} : vector<8x16xf32> to vector<1x8xf32>
    %116 = vector.broadcast %115 : vector<1x8xf32> to vector<72x8xf32>
    %117 = arith.addf %114, %116 : vector<72x8xf32>
    %118 = arith.truncf %117 : vector<72x8xf32> to vector<72x8xbf16>
    %c0_39 = arith.constant 0 : index
    %c0_40 = arith.constant 0 : index
    %c8_41 = arith.constant 8 : index
    %119 = vector.load %arg6[%c0_39, %c0_40, %c8_41] : memref<1x72x16xbf16, #tpu.memory_space<vmem>>, vector<1x72x8xbf16>
    %120 = vector.shape_cast %119 : vector<1x72x8xbf16> to vector<72x8xbf16>
    %121 = vector.shape_cast %118 : vector<72x8xbf16> to vector<1x72x8xbf16>
    tpu.vector_store %arg6[%c0_39, %c0_40, %c8_41], %121 {strides = array<i32>} : memref<1x72x16xbf16, #tpu.memory_space<vmem>>, vector<1x72x8xbf16>,
    return
  }
  func.func @transform_0(%arg0: i32) -> (i32, i32, i32) {
    %c0_i32 = arith.constant 0 : i32
    %c0_i32_0 = arith.constant 0 : i32
    %c0_i32_1 = arith.constant 0 : i32
    return %arg0, %c0_i32, %c0_i32_0 : i32, i32, i32
  }
  func.func @transform_1(%arg0: i32) -> (i32, i32) {
    %c0_i32 = arith.constant 0 : i32
    %c0_i32_0 = arith.constant 0 : i32
    %c0_i32_1 = arith.constant 0 : i32
    return %c0_i32, %c0_i32_0 : i32, i32
  }
  func.func @transform_2(%arg0: i32) -> (i32, i32) {
    %c0_i32 = arith.constant 0 : i32
    %c0_i32_0 = arith.constant 0 : i32
    %c0_i32_1 = arith.constant 0 : i32
    return %c0_i32, %c0_i32_0 : i32, i32
  }
  func.func @transform_3(%arg0: i32) -> (i32, i32) {
    %c0_i32 = arith.constant 0 : i32
    %c0_i32_0 = arith.constant 0 : i32
    %c0_i32_1 = arith.constant 0 : i32
    return %c0_i32, %c0_i32_0 : i32, i32
  }
  func.func @transform_4(%arg0: i32) -> (i32, i32) {
    %c0_i32 = arith.constant 0 : i32
    %c0_i32_0 = arith.constant 0 : i32
    %c0_i32_1 = arith.constant 0 : i32
    return %c0_i32, %c0_i32_0 : i32, i32
  }
  func.func @transform_5(%arg0: i32) -> (i32, i32, i32) {
    %c0_i32 = arith.constant 0 : i32
    %c0_i32_0 = arith.constant 0 : i32
    %c0_i32_1 = arith.constant 0 : i32
    return %arg0, %c0_i32, %c0_i32_0 : i32, i32, i32
  }
}

</mosaic_0001>

<bundles_post_ra>
// kernel: building_block_forward.1
= control target key start
LH: loop header
LB: loop body
LE: loop exit
PB: predicated region body
PF: predicated region fallthrough
CT: control target
= control target key end

     0   :  { %s2815_s18 = smov 0   ;;  %s4118_s0 = inlined_call_operand.vmem [shape: s8[2,328,8], index: 0, kind: input, shape index: {}]   ;;  %s4119_s1 = inlined_call_operand.vmem [shape: bf16[72,8], index: 1, kind: input, shape index: {}]   ;;  %s4120_s2 = inlined_call_operand.vmem [shape: bf16[8,16], index: 2, kind: input, shape index: {}]   ;;  %s4121_s3 = inlined_call_operand.vmem [shape: f32[8,8], index: 3, kind: input, shape index: {}]   ;;  %s4122_s4 = inlined_call_operand.vmem [shape: f32[8,16], index: 4, kind: input, shape index: {}]   ;;  %s4123_s5 = inlined_call_operand.vmem [shape: bf16[2,72,16], index: 5, kind: output, shape index: {}]  }
   0x1 LB: > { %s2363_s19 = sadd.s32 4294967295, %s2772_s18   ;;  %p2367_p0 = scmp.ge.s32.totalorder %s2772_s18, 1  ;;  %s2772_s18 = sphi %s2815_s18, %s15_s18  }
   0x2   : > { %p187_p1 = scmp.lt.s32.totalorder %s2772_s18, 3 }
   0x4   : > { %p188_p2 = pnand %p2367_p0, %p187_p1 }
   0x6   : > { %191 = sbr.rel (%p188_p2) target bundleno = 796 (0x31c), region = 40 }
   0xd   : > { %p215_p3 = scmp.lt.s32.totalorder %s2363_s19, 1  ;;  %vm925_vm0 = vcmask 1042432   ;;  %vm926_vm1 = vcmask 1046532   ;;  %s2774_s24 = smov 56   ;;  %vm633_vm3 = vsmask.f32 3328 }
   0xe   : > { %vm2888_vm2 = vmor %vm925_vm0, %vm926_vm1  ;;  %s2775_s25 = smov 24   ;;  %s2776_s26 = smov 64   ;;  %vm634_vm4 = vsmask.f32 7440  ;;  %vm1018_vm6 = vsmask.f32 2304 }
   0xf   : > { %s4235_s19 = smov (!%p215_p3, %s2363_s19), 1  ;;  %vm2969_vm5 = vmor %vm633_vm3, %vm634_vm4  ;;  %vm1019_vm7 = vsmask.f32 6416  ;;  %s2777_s27 = smov 8   ;;  %vm598_vm9 = vcmask 60416   ;;  %vm757_vm10 = vcmask 126016  }
  0x10   : > { %s2726_s20 = smul.u32 82, %s4235_s19  ;;  %s2778_s28 = smov 16   ;;  %vm3039_vm8 = vmor %vm1018_vm6, %vm1019_vm7  ;;  %vm890_vm11 = vcmask 191616   ;;  %vm983_vm12 = vcmask 257216   ;;  %vm1146_vm13 = vcmask 322816   ;;  %vm2783_vm14 = vmmov 0  }
  0x11   : > { %s2779_s29 = smov 32   ;;  %s2780_s30 = smov 40   ;;  %vm1281_vm15 = vcmask 388416   ;;  %vm1547_vm0 = vcmask 1043456   ;;  %vm1324_vm1 = vcmask 454016   ;;  %vm1388_vm3 = vcmask 519616  }
  0x12   : > { %s2829_s23 = scalar_lea.vmem %s4118_s0, %s2726_s20  ;;  %s2781_s6 = smov 48   ;;  %vm1453_vm4 = vcmask 585216   ;;  %vm1531_vm6 = vcmask 588800  }
  0x13   : > { %v2711_v0 = vld [vmem:[%s2829_s23 + $0x14] sm:$0xff]   ;;  %v2833_v1 = vld [vmem:[%s2829_s23 + $0x28] sm:$0xff]   ;;  %v2836_v2 = vld [vmem:[%s2829_s23] sm:$0xff]  }
  0x14   : > { %v2582_v3 = vunpack.c.1.s8 %v2711_v0  ;;  %v2585_v4 = vunpack.c.2.s8 %v2711_v0  ;;  %v2581_v5 = vunpack.c.0.s8 %v2711_v0  ;;  %v2602_v6 = vunpack.c.1.s8 %v2833_v1 }
  0x15   : > { %v2605_v7 = vunpack.c.2.s8 %v2833_v1  ;;  %v2562_v8 = vunpack.c.1.s8 %v2836_v2  ;;  %v2565_v9 = vunpack.c.2.s8 %v2836_v2  ;;  %v2586_v10 = vunpack.c.3.s8 %v2711_v0 }
  0x16   : > { %v317_v11 = vcvt.s32.f32 %v2582_v3  ;;  %v318_v12 = vcvt.s32.f32 %v2585_v4  ;;  %v327_v13 = vcvt.s32.f32 %v2602_v6  ;;  %v2846_v20 = vcvt.s32.f32 %v2581_v5 }
  0x17   : > { %v328_v14 = vcvt.s32.f32 %v2605_v7  ;;  %v307_v15 = vcvt.s32.f32 %v2562_v8  ;;  %v308_v16 = vcvt.s32.f32 %v2565_v9  ;;  %v319_v17 = vcvt.s32.f32 %v2586_v10 }
  0x18   : > { %v2842_v18 = vmul.f32 0.25, %v317_v11  ;;  %v2844_v19 = vmul.f32 0.25, %v318_v12  ;;  %v2848_v21 = vmul.f32 0.25, %v327_v13  ;;  %v2870_v35 = vmul.f32 0.25, %v2846_v20 }
  0x19   : > { %v2850_v22 = vmul.f32 0.25, %v328_v14  ;;  %v2852_v23 = vmul.f32 0.25, %v307_v15  ;;  %v2854_v24 = vmul.f32 0.25, %v308_v16  ;;  %v2856_v25 = vmul.f32 0.25, %v319_v17 }
  0x1a   : > { %v4132_v26 = vfloor.f32 %v2842_v18  ;;  %v4131_v27 = vfloor.f32 %v2844_v19  ;;  %v407_v28 = vfloor.f32 %v2848_v21  ;;  %4161 = vst [vmem:[#allocation3_spill] sm:$0xff] %v2870_v35  ;;  %v4124_v48 = vfloor.f32 %v2870_v35 }
  0x1b   : > { %v408_v29 = vfloor.f32 %v2850_v22  ;;  %v4126_v30 = vfloor.f32 %v2852_v23  ;;  %v4128_v31 = vfloor.f32 %v2854_v24  ;;  %v4127_v32 = vfloor.f32 %v2856_v25 }
  0x1c   : > { %v437_v33 = vmul.f32 4.0, %v4132_v26  ;;  %v438_v34 = vmul.f32 4.0, %v4131_v27  ;;  %v447_v36 = vmul.f32 4.0, %v407_v28  ;;  %v2601_v57 = vunpack.c.0.s8 %v2833_v1 }
  0x1d   : > { %v448_v37 = vmul.f32 4.0, %v408_v29  ;;  %v427_v38 = vmul.f32 4.0, %v4126_v30  ;;  %v428_v41 = vmul.f32 4.0, %v4128_v31  ;;  %v439_v45 = vmul.f32 4.0, %v4127_v32 }
  0x1e   : > { %v477_v39 = vsub.f32 %v317_v11, %v437_v33  ;;  %v478_v40 = vsub.f32 %v318_v12, %v438_v34  ;;  %v487_v42 = vsub.f32 %v327_v13, %v447_v36  ;;  %v326_v4 = vcvt.s32.f32 %v2601_v57 }
  0x1f   : > { %v488_v43 = vsub.f32 %v328_v14, %v448_v37  ;;  %v467_v44 = vsub.f32 %v307_v15, %v427_v38  ;;  %v468_v49 = vsub.f32 %v308_v16, %v428_v41  ;;  %v479_v53 = vsub.f32 %v319_v17, %v439_v45 }
  0x20   : > { %v2381_v46 = vadd.f32 -1.0, %v477_v39  ;;  %v2382_v47 = vadd.f32 -1.0, %v478_v40  ;;  %v2391_v50 = vadd.f32 -1.0, %v487_v42  ;;  %v366_v12 = vmul.f32 0.25, %v326_v4 }
  0x21   : > { %v2392_v51 = vadd.f32 -1.0, %v488_v43  ;;  %v2371_v52 = vadd.f32 -1.0, %v467_v44  ;;  %v2372_v56 = vadd.f32 -1.0, %v468_v49  ;;  %v2383_v62 = vadd.f32 -1.0, %v479_v53 }
  0x22   : > { %v2511_v54 = vpack.c.bf16 %v2381_v46, %v2381_v46  ;;  %v2883_v55 = vpack.c.bf16 %v2382_v47, %v2382_v47  ;;  %v2892_v59 = vpack.c.bf16 %v2391_v50, %v2391_v50  ;;  %v2566_v15 = vunpack.c.3.s8 %v2836_v2 }
  0x23   : > { %v2894_v60 = vpack.c.bf16 %v2392_v51, %v2392_v51  ;;  %v2896_v61 = vpack.c.bf16 %v2371_v52, %v2371_v52  ;;  %v2899_v3 = vpack.c.bf16 %v2372_v56, %v2372_v56  ;;  %v2904_v8 = vpack.c.bf16 %v2383_v62, %v2383_v62 }
  0x24   : > { %v2450_v63 = vrot.slane %v2511_v54, 9  ;;  %v1336_v0 = vrot.slane %v2883_v55, 5  ;;  %v930_v5 = vrot.slane %v2892_v59, 5  ;;  %v436_v16 = vmul.f32 4.0, %v4124_v48 }
  0x25   : > { %v933_v6 = vrot.slane %v2894_v60, 5  ;;  %v2451_v7 = vrot.slane %v2896_v61, 9  ;;  %v1400_v10 = vrot.slane %v2899_v3, 5  ;;  %v1339_v14 = vrot.slane %v2904_v8, 5  ;;  %600 = vst.msk [vmem:[#allocation2 + $0x4] sm:$0xf] %vm598_vm9, %v2896_v61 }
  0x26   : > { %v1337_v9 = vsel %vm2888_vm2, %v2450_v63, %v1336_v0  ;;  %v1338_v11 = vrot.slane %v1336_v0, 4  ;;  %v932_v13 = vrot.slane %v930_v5, 4  ;;  %v2918_v33 = vfloor.f32 %v366_v12  ;;  %v2955_v12 = vld [vmem:[%s2829_s23 + $0x3c] sm:$0xff]   ;;  %601 = vst.msk [vmem:[#allocation2 + $0x8] sm:$0xf] %vm598_vm9, %v2899_v3 }
  0x27   : > { %1361 = vrot.lane.b32.xlu0 %v1337_v9, %s2774_s24  ;;  %v1401_v17 = vsel %vm2888_vm2, %v2451_v7, %v1400_v10  ;;  %v646_v34 = vshll.u32 %v2511_v54, 16  ;;  %v309_v37 = vcvt.s32.f32 %v2566_v15  ;;  %v476_v38 = vsub.f32 %v2846_v20, %v436_v16 }
  0x28   : > { %4164 = vst [vmem:[#allocation4_spill] sm:$0xff] %v2918_v33  ;;  %v934_v36 = vsel %vm2888_vm2, %v932_v13, %v933_v6  ;;  %v1340_v39 = vsel %vm2888_vm2, %v1338_v11, %v1339_v14  ;;  %v446_v40 = vmul.f32 4.0, %v2918_v33  ;;  %v2561_v42 = vunpack.c.0.s8 %v2836_v2 }
  0x29   : > { %958 = vrot.lane.b32.xlu1 %v934_v36, %s2775_s25  ;;  %v2931_v41 = vrot.slane %v646_v34, 5  ;;  %v2935_v43 = vmul.f32 0.25, %v309_v37  ;;  %v2380_v20 = vadd.f32 -1.0, %v476_v38  ;;  %v779_v44 = vshll.u32 %v2896_v61, 16 }
  0x2a   : > { %v650_v45 = vshrl.u32 %v2511_v54, 16  ;;  %v486_v46 = vsub.f32 %v326_v4, %v446_v40  ;;  %v306_v47 = vcvt.s32.f32 %v2561_v42  ;;  %v656_v49 = vshll.u32 %v2883_v55, 16 }
  0x2b   : > { %1426 = vrot.lane.b32.xlu0 %v1401_v17, %s2776_s26  ;;  %v783_v50 = vshrl.u32 %v2896_v61, 16  ;;  %v4125_v51 = vfloor.f32 %v2935_v43  ;;  %v2941_v52 = vpack.c.bf16 %v2380_v20, %v2380_v20  ;;  %v2943_v2 = vrot.slane %v779_v44, 5 }
  0x2c   : > { %v652_v53 = vrot.slane %v650_v45, 4  ;;  %v2390_v56 = vadd.f32 -1.0, %v486_v46  ;;  %v346_v57 = vmul.f32 0.25, %v306_v47  ;;  %v2959_v17 = vrot.slane %v656_v49, 5 }
  0x2d   : > { %1363 = vrot.lane.b32.xlu1 %v1340_v39, %s2774_s24  ;;  %v785_v54 = vrot.slane %v783_v50, 4  ;;  %v429_v62 = vmul.f32 4.0, %v4125_v51  ;;  %v637_v63 = vshrl.u32 %v2941_v52, 16  ;;  %v640_v0 = vshll.u32 %v2941_v52, 16 }
  0x2e   : > { %v2950_v4 = vpack.c.bf16 %v2390_v56, %v2390_v56  ;;  %v386_v7 = vfloor.f32 %v346_v57  ;;  %v653_v9 = vor.u32 %v652_v53, %v2931_v41  ;;  %v1402_v36 = vrot.slane %v1400_v10, 4 }
  0x2f   : > { %v786_v11 = vor.u32 %v785_v54, %v2943_v2  ;;  %v469_v13 = vsub.f32 %v309_v37, %v429_v62  ;;  %v639_v15 = vrot.slane %v637_v63, 4  ;;  %v2957_v16 = vrot.slane %v640_v0, 5 }
  0x30   : > { %v4133_v34 = vrot.slane %v2950_v4, 5  ;;  %v426_v38 = vmul.f32 4.0, %v386_v7  ;;  %v654_v39 = vrot.slane %v653_v9, 4  ;;  %v789_v20 = vshll.u32 %v2899_v3, 16 }
  0x31   : > { %v2373_v40 = vadd.f32 -1.0, %v469_v13  ;;  %v643_v42 = vor.u32 %v2957_v16, %v639_v15  ;;  %v2621_v44 = vunpack.c.0.s8 %v2955_v12  ;;  %v2973_v10 = vrot.slane %v786_v11, 4 }
  0x32   : > { %v929_v37 = vrot.slane %v4133_v34, 4  ;;  %v466_v46 = vsub.f32 %v306_v47, %v426_v38  ;;  %v2622_v49 = vunpack.c.1.s8 %v2955_v12  ;;  %v659_v56 = vsel %vm2969_vm5, %v654_v39, %v2959_v17 }
  0x33   : > { %v2976_v50 = vpack.c.bf16 %v2373_v40, %v2373_v40  ;;  %v644_v53 = vrot.slane %v643_v42, 4  ;;  %v336_v57 = vcvt.s32.f32 %v2621_v44  ;;  %v2625_v47 = vunpack.c.2.s8 %v2955_v12 }
  0x34   : > { %v931_v54 = vsel %vm2888_vm2, %v929_v37, %v930_v5  ;;  %v2370_v62 = vadd.f32 -1.0, %v466_v46  ;;  %v337_v63 = vcvt.s32.f32 %v2622_v49  ;;  %v1157_v11 = vshrl.u32 %v2950_v4, 16 }
  0x35   : > { %956 = vrot.lane.b32.xlu0 %v931_v54, %s2775_s25  ;;  %v4134_v0 = vrot.slane %v2976_v50, 5  ;;  %v649_v7 = vsel %vm2969_vm5, %v644_v53, %v2931_v41  ;;  %v376_v9 = vmul.f32 0.25, %v336_v57  ;;  %v338_v38 = vcvt.s32.f32 %v2625_v47  ;;  %602 = vst.msk [vmem:[#allocation2 + $0xc] sm:$0xf] %vm598_vm9, %v2976_v50 }
  0x36   : > { %v2992_v13 = vpack.c.bf16 %v2370_v62, %v2370_v62  ;;  %v377_v15 = vmul.f32 0.25, %v337_v63  ;;  %v1160_v5 = vshll.u32 %v2950_v4, 16  ;;  %v1159_v42 = vrot.slane %v1157_v11, 5 }
  0x37   : > { %v1404_v39 = vsel %vm2888_vm2, %v1402_v36, %v4134_v0  ;;  %v416_v40 = vfloor.f32 %v376_v9  ;;  %v1166_v44 = vshrl.u32 %v2892_v59, 16  ;;  %v378_v49 = vmul.f32 0.25, %v338_v38 }
  0x38   : > { %1428 = vrot.lane.b32.xlu1 %v1404_v39, %s2776_s26  ;;  %v770_v41 = vshrl.u32 %v2992_v13, 16  ;;  %v773_v37 = vshll.u32 %v2992_v13, 16  ;;  %v417_v46 = vfloor.f32 %v377_v15  ;;  %v1162_v54 = vrot.slane %v1160_v5, 6  ;;  %599 = vst.msk [vmem:[#allocation2] sm:$0xf] %vm598_vm9, %v2992_v13 }
  0x39   : > { %730 = vrot.lane.b32.xlu0 %v649_v7, %s2777_s27  ;;  %v456_v53 = vmul.f32 4.0, %v416_v40  ;;  %v3005_v36 = vadd.f32 %v416_v40, %v2918_v33  ;;  %v1168_v62 = vrot.slane %v1166_v44, 5  ;;  %v418_v48 = vfloor.f32 %v378_v49 }
  0x3a   : > { %v772_v47 = vrot.slane %v770_v41, 4  ;;  %v775_v9 = vrot.slane %v773_v37, 5  ;;  %v457_v11 = vmul.f32 4.0, %v417_v46  ;;  %v3009_v39 = vadd.f32 %v417_v46, %v407_v28 }
  0x3b   : > { %v496_v15 = vsub.f32 %v336_v57, %v456_v53  ;;  %v1163_v51 = vor.u32 %v1162_v54, %v1159_v42  ;;  %v1169_v30 = vshll.u32 %v2892_v59, 16  ;;  %v1176_v31 = vshrl.u32 %v2894_v60, 16 }
  0x3c   : > { %v776_v32 = vor.u32 %v775_v9, %v772_v47  ;;  %v497_v7 = vsub.f32 %v337_v63, %v457_v11  ;;  %v1179_v40 = vshll.u32 %v2894_v60, 16  ;;  %v3015_v5 = vrot.slane %v789_v20, 5  ;;  %v3044_v11 = vld [vmem:[%s2829_s23 + $0x1c] sm:$0xff]  }
  0x3d   : > { %732 = vrot.lane.b32.xlu0 %v659_v56, %s2777_s27  ;;  %v2400_v44 = vadd.f32 -1.0, %v496_v15  ;;  %v458_v41 = vmul.f32 4.0, %v418_v48  ;;  %v3019_v21 = vadd.f32 %v418_v48, %v408_v29  ;;  %v3021_v42 = vrot.slane %v1163_v51, 4 }
  0x3e   : > { %v777_v28 = vrot.slane %v776_v32, 4  ;;  %v2401_v57 = vadd.f32 -1.0, %v497_v7  ;;  %v1171_v59 = vrot.slane %v1169_v30, 6  ;;  %v1178_v46 = vrot.slane %v1176_v31, 5 }
  0x3f   : > { %v2531_v63 = vpack.c.bf16 %v2400_v44, %v2400_v44  ;;  %v498_v37 = vsub.f32 %v338_v38, %v458_v41  ;;  %v793_v49 = vshrl.u32 %v2899_v3, 16  ;;  %v1181_v22 = vrot.slane %v1179_v40, 6 }
  0x40   : > { %v782_v20 = vsel %vm2969_vm5, %v777_v28, %v2943_v2  ;;  %v2532_v56 = vpack.c.bf16 %v2401_v57, %v2401_v57  ;;  %v3027_v53 = vor.u32 %v1171_v59, %v1168_v62  ;;  %v3034_v31 = vsel %vm2969_vm5, %v2973_v10, %v3015_v5 }
  0x41   : > { %863 = vrot.lane.b32.xlu1 %v782_v20, %s2778_s28  ;;  %v1022_v29 = vshrl.u32 %v2531_v63, 16  ;;  %v1025_v32 = vshll.u32 %v2531_v63, 16  ;;  %v2402_v30 = vadd.f32 -1.0, %v498_v37  ;;  %v799_v2 = vshll.u32 %v2976_v50, 16 }
  0x42   : > { %v1031_v48 = vshrl.u32 %v2532_v56, 16  ;;  %v1034_v51 = vshll.u32 %v2532_v56, 16  ;;  %v795_v9 = vrot.slane %v793_v49, 4  ;;  %v1173_v10 = vsel %vm3039_vm8, %v3021_v42, %v3027_v53 }
  0x43   : > { %v1024_v54 = vrot.slane %v1022_v29, 5  ;;  %v1027_v62 = vrot.slane %v1025_v32, 6  ;;  %v2533_v47 = vpack.c.bf16 %v2402_v30, %v2402_v30  ;;  %v3050_v40 = vor.u32 %v1181_v22, %v1178_v46  ;;  %v3060_v22 = vld [vmem:[%s2829_s23 + $0x8] sm:$0xff]  }
  0x44   : > { %v1033_v15 = vrot.slane %v1031_v48, 5  ;;  %v1036_v7 = vrot.slane %v1034_v51, 6  ;;  %v1174_v57 = vrot.slane %v3027_v53, 4  ;;  %v660_v63 = vshrl.u32 %v2883_v55, 16 }
  0x45   : > { %865 = vrot.lane.b32.xlu1 %v3034_v31, %s2778_s28  ;;  %v1028_v44 = vor.u32 %v1027_v62, %v1024_v54  ;;  %v1041_v41 = vshrl.u32 %v2533_v47, 16  ;;  %v1044_v28 = vshll.u32 %v2533_v47, 16  ;;  %v666_v37 = vshll.u32 %v2904_v8, 16 }
  0x46   : > { %v1037_v59 = vor.u32 %v1036_v7, %v1033_v15  ;;  %v2589_v49 = vunpack.c.0.s8 %v3044_v11  ;;  %v796_v46 = vor.u32 %v795_v9, %v3015_v5  ;;  %v801_v32 = vrot.slane %v799_v2, 5  ;;  %v3074_v9 = vld [vmem:[%s2829_s23 + $0x30] sm:$0xff]  }
  0x47   : > { %v1029_v20 = vrot.slane %v1028_v44, 4  ;;  %v1043_v56 = vrot.slane %v1041_v41, 5  ;;  %v1046_v42 = vrot.slane %v1044_v28, 6  ;;  %v662_v30 = vrot.slane %v660_v63, 4 }
  0x48   : > { %v1039_v29 = vrot.slane %v1037_v59, 4  ;;  %v320_v48 = vcvt.s32.f32 %v2589_v49  ;;  %v668_v51 = vrot.slane %v666_v37, 5  ;;  %v670_v54 = vshrl.u32 %v2904_v8, 16 }
  0x49   : > { %v1038_v53 = vsel %vm3039_vm8, %v1029_v20, %v1037_v59  ;;  %v3064_v55 = vor.u32 %v1046_v42, %v1043_v56  ;;  %v663_v5 = vor.u32 %v662_v30, %v2959_v17  ;;  %v2569_v47 = vunpack.c.0.s8 %v3060_v22 }
  0x4a   : > { %1119 = vrot.lane.b32.xlu0 %v1038_v53, %s2779_s29  ;;  %v3069_v62 = vmul.f32 0.25, %v320_v48  ;;  %v803_v2 = vshrl.u32 %v2976_v50, 16  ;;  %v797_v7 = vrot.slane %v796_v46, 4  ;;  %v672_v44 = vrot.slane %v670_v54, 4 }
  0x4b   : > { %v1048_v15 = vsel %vm3039_vm8, %v1039_v29, %v3064_v55  ;;  %v2606_v41 = vunpack.c.3.s8 %v2833_v1  ;;  %v1183_v17 = vsel %vm3039_vm8, %v1174_v57, %v3050_v40  ;;  %v664_v28 = vrot.slane %v663_v5, 4  ;;  %v3093_v57 = vld [vmem:[%s2829_s23 + $0x44] sm:$0xff]  }
  0x4c   : > { %4169 = vst [vmem:[#allocation5_spill] sm:$0xff] %v3069_v62  ;;  %1121 = vrot.lane.b32.xlu1 %v1048_v15, %s2779_s29  ;;  %v4130_v59 = vfloor.f32 %v3069_v62  ;;  %v310_v63 = vcvt.s32.f32 %v2569_v47  ;;  %v805_v37 = vrot.slane %v803_v2, 4  ;;  %v2609_v20 = vunpack.c.0.s8 %v3074_v9 }
  0x4d   : > { %v329_v49 = vcvt.s32.f32 %v2606_v41  ;;  %v2626_v56 = vunpack.c.3.s8 %v2955_v12  ;;  %v673_v42 = vor.u32 %v672_v44, %v668_v51  ;;  %v802_v29 = vsel %vm2969_vm5, %v797_v7, %v801_v32 }
  0x4e   : > { %1254 = vrot.lane.b32.xlu0 %v1173_v10, %s2780_s30  ;;  %v440_v1 = vmul.f32 4.0, %v4130_v59  ;;  %v3090_v46 = vmul.f32 0.25, %v310_v63  ;;  %v935_v53 = vrot.slane %v933_v6, 4  ;;  %v330_v54 = vcvt.s32.f32 %v2609_v20 }
  0x4f   : > { %v369_v30 = vmul.f32 0.25, %v329_v49  ;;  %v669_v12 = vsel %vm2969_vm5, %v664_v28, %v668_v51  ;;  %v339_v47 = vcvt.s32.f32 %v2626_v56  ;;  %v806_v2 = vor.u32 %v805_v37, %v801_v32 }
  0x50   : > { %4170 = vst [vmem:[#allocation6_spill] sm:$0xff] %v3090_v46  ;;  %1256 = vrot.lane.b32.xlu1 %v1183_v17, %s2780_s30  ;;  %v480_v10 = vsub.f32 %v320_v48, %v440_v1  ;;  %v4129_v5 = vfloor.f32 %v3090_v46  ;;  %v370_v44 = vmul.f32 0.25, %v330_v54  ;;  %v2629_v41 = vunpack.c.0.s8 %v3093_v57 }
  0x51   : > { %v409_v15 = vfloor.f32 %v369_v30  ;;  %v674_v6 = vrot.slane %v673_v42, 4  ;;  %v379_v17 = vmul.f32 0.25, %v339_v47  ;;  %v2570_v1 = vunpack.c.1.s8 %v3060_v22 }
  0x52   : > { %1297 = vrot.lane.b32.xlu0 %v3034_v31, %s2781_s6  ;;  %v2384_v60 = vadd.f32 -1.0, %v480_v10  ;;  %v430_v7 = vmul.f32 4.0, %v4129_v5  ;;  %v410_v48 = vfloor.f32 %v370_v44  ;;  %v340_v20 = vcvt.s32.f32 %v2629_v41 }
  0x53   : > { %v449_v51 = vmul.f32 4.0, %v409_v15  ;;  %v419_v56 = vfloor.f32 %v379_v17  ;;  %v807_v31 = vrot.slane %v806_v2, 4  ;;  %v311_v34 = vcvt.s32.f32 %v2570_v1 }
  0x54   : > { %1299 = vrot.lane.b32.xlu1 %v802_v29, %s2781_s6  ;;  %v3110_v32 = vpack.c.bf16 %v2384_v60, %v2384_v60  ;;  %v470_v37 = vsub.f32 %v310_v63, %v430_v7  ;;  %v450_v42 = vmul.f32 4.0, %v410_v48  ;;  %v380_v10 = vmul.f32 0.25, %v340_v20 }
  0x55   : > { %v489_v30 = vsub.f32 %v329_v49, %v449_v51  ;;  %v459_v59 = vmul.f32 4.0, %v419_v56  ;;  %v3115_v27 = vadd.f32 %v419_v56, %v409_v15  ;;  %v1184_v49 = vrot.slane %v3050_v40, 4 }
  0x56   : > { %734 = vrot.lane.b32.xlu0 %v669_v12, %s2777_s27  ;;  %v676_v5 = vshll.u32 %v3110_v32, 16  ;;  %v2374_v44 = vadd.f32 -1.0, %v470_v37  ;;  %v490_v26 = vsub.f32 %v330_v54, %v450_v42  ;;  %v420_v60 = vfloor.f32 %v380_v10 }
  0x57   : > { %4171 = vst [vmem:[#allocation7_spill] sm:$0xff] %v3115_v27  ;;  %v2393_v41 = vadd.f32 -1.0, %v489_v30  ;;  %v499_v2 = vsub.f32 %v339_v47, %v459_v59  ;;  %v3129_v37 = vmul.f32 0.25, %v311_v34  ;;  %v1424_v38 = vrot.slane %v2941_v52, 5 }
  0x58   : > { %v3117_v63 = vrot.slane %v676_v5, 5  ;;  %v3119_v7 = vpack.c.bf16 %v2374_v44, %v2374_v44  ;;  %v2394_v51 = vadd.f32 -1.0, %v490_v26  ;;  %v460_v12 = vmul.f32 4.0, %v420_v60 }
  0x59   : > { %v2524_v17 = vpack.c.bf16 %v2393_v41, %v2393_v41  ;;  %v3122_v0 = vadd.f32 %v420_v60, %v410_v48  ;;  %v2403_v5 = vadd.f32 -1.0, %v499_v2  ;;  %4173 = vst [vmem:[#allocation9_spill] sm:$0xff] %v3129_v37  ;;  %v4135_v30 = vfloor.f32 %v3129_v37 }
  0x5a   : > { %v679_v15 = vsel %vm2969_vm5, %v674_v6, %v3117_v63  ;;  %867 = vrot.lane.b32.xlu0 %v802_v29, %s2778_s28  ;;  %v809_v54 = vshll.u32 %v3119_v7, 16  ;;  %v3132_v40 = vpack.c.bf16 %v2394_v51, %v2394_v51  ;;  %v500_v26 = vsub.f32 %v340_v20, %v460_v12  ;;  %603 = vst.msk [vmem:[#allocation2 + $0x10] sm:$0xf] %vm598_vm9, %v3119_v7 }
  0x5b   : > { %4172 = vst [vmem:[#allocation8_spill] sm:$0xff] %v3122_v0  ;;  %736 = vrot.lane.b32.xlu1 %v679_v15, %s2777_s27  ;;  %v936_v59 = vrot.slane %v2524_v17, 5  ;;  %v1186_v47 = vshrl.u32 %v2524_v17, 16  ;;  %v2534_v56 = vpack.c.bf16 %v2403_v5, %v2403_v5  ;;  %v1189_v1 = vshll.u32 %v2524_v17, 16 }
  0x5c   : > { %v811_v48 = vrot.slane %v809_v54, 5  ;;  %v939_v42 = vrot.slane %v3132_v40, 5  ;;  %v2404_v10 = vadd.f32 -1.0, %v500_v26  ;;  %v1196_v51 = vshrl.u32 %v3132_v40, 16 }
  0x5d   : > { %v937_v29 = vsel %vm2888_vm2, %v935_v53, %v936_v59  ;;  %v938_v6 = vrot.slane %v936_v59, 4  ;;  %v1051_v41 = vshrl.u32 %v2534_v56, 16  ;;  %v1054_v20 = vshll.u32 %v2534_v56, 16 }
  0x5e   : > { %v812_v44 = vsel %vm2969_vm5, %v807_v31, %v811_v48  ;;  %960 = vrot.lane.b32.xlu0 %v937_v29, %s2775_s25  ;;  %v1188_v60 = vrot.slane %v1186_v47, 5  ;;  %v2535_v53 = vpack.c.bf16 %v2404_v10, %v2404_v10  ;;  %v1191_v17 = vrot.slane %v1189_v1, 6 }
  0x5f   : > { %869 = vrot.lane.b32.xlu1 %v812_v44, %s2778_s28  ;;  %v940_v2 = vsel %vm2888_vm2, %v938_v6, %v939_v42  ;;  %v1053_v12 = vrot.slane %v1051_v41, 5  ;;  %v1056_v15 = vrot.slane %v1054_v20, 6  ;;  %v1199_v31 = vshll.u32 %v3132_v40, 16 }
  0x60   : > { %v431_v54 = vmul.f32 4.0, %v4135_v30  ;;  %v1061_v5 = vshrl.u32 %v2535_v53, 16  ;;  %v1064_v59 = vshll.u32 %v2535_v53, 16  ;;  %v1192_v26 = vor.u32 %v1191_v17, %v1188_v60 }
  0x61   : > { %v1198_v47 = vrot.slane %v1196_v51, 5  ;;  %v1057_v56 = vor.u32 %v1056_v15, %v1053_v12  ;;  %v1201_v29 = vrot.slane %v1199_v31, 6  ;;  %v813_v6 = vshrl.u32 %v3119_v7, 16 }
  0x62   : > { %v471_v28 = vsub.f32 %v311_v34, %v431_v54  ;;  %v1063_v1 = vrot.slane %v1061_v5, 5  ;;  %v1066_v10 = vrot.slane %v1064_v59, 6  ;;  %v1341_v41 = vrot.slane %v1339_v14, 4 }
  0x63   : > { %962 = vrot.lane.b32.xlu1 %v940_v2, %s2775_s25  ;;  %v4174_v20 = vrot.slane %v3064_v55, 4  ;;  %v1059_v53 = vrot.slane %v1057_v56, 4  ;;  %v1342_v17 = vrot.slane %v3110_v32, 5  ;;  %v1194_v51 = vrot.slane %v1192_v26, 4 }
  0x64   : > { %v2375_v60 = vadd.f32 -1.0, %v471_v28  ;;  %v3160_v34 = vor.u32 %v1066_v10, %v1063_v1  ;;  %v3162_v2 = vor.u32 %v1201_v29, %v1198_v47  ;;  %v815_v12 = vrot.slane %v813_v6, 4 }
  0x65   : > { %v1058_v30 = vsel %vm3039_vm8, %v4174_v20, %v1057_v56  ;;  %v1193_v8 = vsel %vm3039_vm8, %v1184_v49, %v1192_v26  ;;  %v2590_v55 = vunpack.c.1.s8 %v3044_v11  ;;  %v1406_v54 = vrot.slane %v3119_v7, 5 }
  0x66   : > { %1123 = vrot.lane.b32.xlu0 %v1058_v30, %s2779_s29  ;;  %v3166_v14 = vpack.c.bf16 %v2375_v60, %v2375_v60  ;;  %v1068_v28 = vsel %vm3039_vm8, %v1059_v53, %v3160_v34  ;;  %v816_v15 = vor.u32 %v815_v12, %v811_v48  ;;  %v680_v5 = vshrl.u32 %v3110_v32, 16 }
  0x67   : > { %1125 = vrot.lane.b32.xlu1 %v1068_v28, %s2779_s29  ;;  %v321_v31 = vcvt.s32.f32 %v2590_v55  ;;  %v1203_v49 = vsel %vm3039_vm8, %v1194_v51, %v3162_v2  ;;  %v1343_v26 = vsel %vm2888_vm2, %v1341_v41, %v1342_v17  ;;  %v2593_v48 = vunpack.c.2.s8 %v3044_v11 }
  0x68   : > { %v819_v30 = vshll.u32 %v3166_v14, 16  ;;  %v817_v59 = vrot.slane %v816_v15, 4  ;;  %v682_v29 = vrot.slane %v680_v5, 4  ;;  %v2573_v6 = vunpack.c.2.s8 %v3060_v22  ;;  %604 = vst.msk [vmem:[#allocation2 + $0x14] sm:$0xf] %vm598_vm9, %v3166_v14 }
  0x69   : > { %v3183_v56 = vmul.f32 0.25, %v321_v31  ;;  %v4176_v32 = vrot.slane %v2976_v50, 5  ;;  %v322_v10 = vcvt.s32.f32 %v2593_v48  ;;  %v823_v20 = vshrl.u32 %v3166_v14, 16 }
  0x6a   : > { %1258 = vrot.lane.b32.xlu0 %v1193_v8, %s2780_s30  ;;  %v821_v47 = vrot.slane %v819_v30, 5  ;;  %v2610_v53 = vunpack.c.1.s8 %v3074_v9  ;;  %v1408_v60 = vrot.slane %v1406_v54, 4  ;;  %v4139_v51 = vrot.slane %v3166_v14, 5 }
  0x6b   : > { %4175 = vst [vmem:[#allocation10_spill] sm:$0xff] %v3183_v56  ;;  %v1405_v1 = vrot.slane %v4176_v32, 4  ;;  %1260 = vrot.lane.b32.xlu1 %v1203_v49, %s2780_s30  ;;  %v4136_v41 = vfloor.f32 %v3183_v56  ;;  %v312_v12 = vcvt.s32.f32 %v2573_v6  ;;  %v3198_v55 = vmul.f32 0.25, %v322_v10 }
  0x6c   : > { %v3196_v8 = vsel %vm2969_vm5, %v817_v59, %v821_v47  ;;  %v825_v28 = vrot.slane %v823_v20, 4  ;;  %v331_v15 = vcvt.s32.f32 %v2610_v53  ;;  %v1344_v5 = vrot.slane %v1342_v17, 4 }
  0x6d   : > { %4177 = vst [vmem:[#allocation11_spill] sm:$0xff] %v3198_v55  ;;  %v441_v30 = vmul.f32 4.0, %v4136_v41  ;;  %v683_v49 = vor.u32 %v682_v29, %v3117_v63  ;;  %v3203_v48 = vmul.f32 0.25, %v312_v12  ;;  %v1407_v6 = vsel %vm2888_vm2, %v1405_v1, %v1406_v54 }
  0x6e   : > { %1301 = vrot.lane.b32.xlu0 %v812_v44, %s2781_s6  ;;  %v4140_v44 = vfloor.f32 %v3198_v55  ;;  %v371_v32 = vmul.f32 0.25, %v331_v15  ;;  %v2613_v59 = vunpack.c.2.s8 %v3074_v9  ;;  %v826_v41 = vor.u32 %v825_v28, %v821_v47 }
  0x6f   : > { %4178 = vst [vmem:[#allocation12_spill] sm:$0xff] %v3203_v48  ;;  %1303 = vrot.lane.b32.xlu1 %v3196_v8, %s2781_s6  ;;  %v481_v20 = vsub.f32 %v321_v31, %v441_v30  ;;  %v4141_v53 = vfloor.f32 %v3203_v48  ;;  %v2630_v17 = vunpack.c.1.s8 %v3093_v57  ;;  %v1410_v63 = vsel %vm2888_vm2, %v1408_v60, %v4139_v51 }
  0x70   : > { %v442_v54 = vmul.f32 4.0, %v4140_v44  ;;  %v411_v29 = vfloor.f32 %v371_v32  ;;  %v941_v1 = vrot.slane %v939_v42, 4  ;;  %v684_v30 = vrot.slane %v683_v49, 4 }
  0x71   : > { %v2385_v31 = vadd.f32 -1.0, %v481_v20  ;;  %v432_v47 = vmul.f32 4.0, %v4141_v53  ;;  %v332_v28 = vcvt.s32.f32 %v2613_v59  ;;  %v341_v33 = vcvt.s32.f32 %v2630_v17 }
  0x72   : > { %1365 = vrot.lane.b32.xlu0 %v1343_v26, %s2774_s24  ;;  %v482_v35 = vsub.f32 %v322_v10, %v442_v54  ;;  %v451_v26 = vmul.f32 4.0, %v411_v29  ;;  %v2633_v0 = vunpack.c.2.s8 %v3093_v57  ;;  %v827_v51 = vrot.slane %v826_v41, 4 }
  0x73   : > { %v3225_v27 = vpack.c.bf16 %v2385_v31, %v2385_v31  ;;  %v472_v60 = vsub.f32 %v312_v12, %v432_v47  ;;  %v372_v44 = vmul.f32 0.25, %v332_v28  ;;  %v381_v32 = vmul.f32 0.25, %v341_v33 }
  0x74   : > { %v2386_v40 = vadd.f32 -1.0, %v482_v35  ;;  %v491_v42 = vsub.f32 %v331_v15, %v451_v26  ;;  %v342_v49 = vcvt.s32.f32 %v2633_v0 }
  0x75   : > { %v4142_v20 = vrot.slane %v3225_v27, 5  ;;  %v686_v59 = vshll.u32 %v3225_v27, 16  ;;  %v690_v10 = vshrl.u32 %v3225_v27, 16  ;;  %v2376_v17 = vadd.f32 -1.0, %v472_v60 }
  0x76   : > { %1430 = vrot.lane.b32.xlu0 %v1407_v6, %s2776_s26  ;;  %v3231_v54 = vpack.c.bf16 %v2386_v40, %v2386_v40  ;;  %v2395_v31 = vadd.f32 -1.0, %v491_v42  ;;  %v412_v53 = vfloor.f32 %v372_v44  ;;  %v421_v12 = vfloor.f32 %v381_v32 }
  0x77   : > { %v1346_v35 = vsel %vm2888_vm2, %v1344_v5, %v4142_v20  ;;  %v688_v41 = vrot.slane %v686_v59, 5  ;;  %v692_v15 = vrot.slane %v690_v10, 4  ;;  %v3237_v0 = vpack.c.bf16 %v2376_v17, %v2376_v17 }
  0x78   : > { %1367 = vrot.lane.b32.xlu1 %v1346_v35, %s2774_s24  ;;  %v696_v6 = vshll.u32 %v3231_v54, 16  ;;  %v2526_v47 = vpack.c.bf16 %v2395_v31, %v2395_v31  ;;  %v452_v26 = vmul.f32 4.0, %v412_v53  ;;  %v461_v60 = vmul.f32 4.0, %v421_v12 }
  0x79   : > { %v689_v44 = vsel %vm2969_vm5, %v684_v30, %v688_v41  ;;  %v693_v40 = vor.u32 %v692_v15, %v688_v41  ;;  %v829_v42 = vshll.u32 %v3237_v0, 16  ;;  %v3244_v32 = vadd.f32 %v421_v12, %v411_v29  ;;  %605 = vst.msk [vmem:[#allocation2 + $0x18] sm:$0xf] %vm598_vm9, %v3237_v0 }
  0x7a   : > { %738 = vrot.lane.b32.xlu0 %v689_v44, %s2777_s27  ;;  %v3247_v5 = vrot.slane %v696_v6, 5  ;;  %v942_v59 = vrot.slane %v2526_v47, 5  ;;  %v492_v10 = vsub.f32 %v332_v28, %v452_v26  ;;  %v501_v17 = vsub.f32 %v341_v33, %v461_v60 }
  0x7b   : > { %4179 = vst [vmem:[#allocation13_spill] sm:$0xff] %v3244_v32  ;;  %v694_v35 = vrot.slane %v693_v40, 4  ;;  %v3249_v20 = vrot.slane %v829_v42, 5  ;;  %v382_v31 = vmul.f32 0.25, %v342_v49  ;;  %v1206_v48 = vshrl.u32 %v2526_v47, 16 }
  0x7c   : > { %1432 = vrot.lane.b32.xlu1 %v1410_v63, %s2776_s26  ;;  %v943_v30 = vsel %vm2888_vm2, %v941_v1, %v942_v59  ;;  %v2396_v41 = vadd.f32 -1.0, %v492_v10  ;;  %v2405_v29 = vadd.f32 -1.0, %v501_v17  ;;  %v944_v28 = vrot.slane %v942_v59, 4 }
  0x7d   : > { %v699_v12 = vsel %vm2969_vm5, %v694_v35, %v3247_v5  ;;  %v3260_v33 = vsel %vm2969_vm5, %v827_v51, %v3249_v20  ;;  %v422_v15 = vfloor.f32 %v382_v31  ;;  %v1209_v1 = vshll.u32 %v2526_v47, 16 }
  0x7e   : > { %871 = vrot.lane.b32.xlu0 %v3196_v8, %s2778_s28  ;;  %v3264_v63 = vpack.c.bf16 %v2396_v41, %v2396_v41  ;;  %v2536_v6 = vpack.c.bf16 %v2405_v29, %v2405_v29  ;;  %v2574_v26 = vunpack.c.3.s8 %v3060_v22  ;;  %v1208_v40 = vrot.slane %v1206_v48, 5 }
  0x7f   : > { %v462_v60 = vmul.f32 4.0, %v422_v15  ;;  %v3267_v44 = vadd.f32 %v422_v15, %v412_v53  ;;  %v833_v42 = vshrl.u32 %v3237_v0, 16  ;;  %v1211_v17 = vrot.slane %v1209_v1, 6 }
  0x80   : > { %740 = vrot.lane.b32.xlu1 %v699_v12, %s2777_s27  ;;  %v4146_v51 = vrot.slane %v3264_v63, 5  ;;  %v1071_v59 = vshrl.u32 %v2536_v6, 16  ;;  %v1074_v10 = vshll.u32 %v2536_v6, 16  ;;  %v1216_v35 = vshrl.u32 %v3264_v63, 16 }
  0x81   : > { %4180 = vst [vmem:[#allocation14_spill] sm:$0xff] %v3267_v44  ;;  %v502_v8 = vsub.f32 %v342_v49, %v462_v60  ;;  %v1219_v47 = vshll.u32 %v3264_v63, 16  ;;  %v313_v31 = vcvt.s32.f32 %v2574_v26  ;;  %v1069_v22 = vrot.slane %v3160_v34, 4 }
  0x82   : > { %964 = vrot.lane.b32.xlu0 %v943_v30, %s2775_s25  ;;  %v1073_v48 = vrot.slane %v1071_v59, 5  ;;  %v1076_v53 = vrot.slane %v1074_v10, 6  ;;  %v1204_v29 = vrot.slane %v3162_v2, 4  ;;  %v1212_v12 = vor.u32 %v1211_v17, %v1208_v40 }
  0x83   : > { %v2406_v41 = vadd.f32 -1.0, %v502_v8  ;;  %v3277_v15 = vmul.f32 0.25, %v313_v31  ;;  %v1218_v6 = vrot.slane %v1216_v35, 5  ;;  %v1221_v1 = vrot.slane %v1219_v47, 6 }
  0x84   : > { %873 = vrot.lane.b32.xlu1 %v3260_v33, %s2778_s28  ;;  %v1077_v49 = vor.u32 %v1076_v53, %v1073_v48  ;;  %v835_v60 = vrot.slane %v833_v42, 4  ;;  %v946_v34 = vsel %vm2888_vm2, %v944_v28, %v4146_v51  ;;  %v2594_v40 = vunpack.c.3.s8 %v3044_v11 }
  0x85   : > { %4181 = vst [vmem:[#allocation15_spill] sm:$0xff] %v3277_v15  ;;  %v2537_v30 = vpack.c.bf16 %v2406_v41, %v2406_v41  ;;  %v4144_v26 = vfloor.f32 %v3277_v15  ;;  %v1213_v42 = vsel %vm3039_vm8, %v1204_v29, %v1212_v12  ;;  %v1214_v28 = vrot.slane %v1212_v12, 4 }
  0x86   : > { %v1078_v2 = vsel %vm3039_vm8, %v1069_v22, %v1077_v49  ;;  %v3295_v8 = vor.u32 %v1221_v1, %v1218_v6  ;;  %v836_v35 = vor.u32 %v835_v60, %v3249_v20  ;;  %v323_v47 = vcvt.s32.f32 %v2594_v40  ;;  %v3299_v22 = vld [vmem:[%s2829_s23 + $0x10] ss:$20 sps:$4 sm:$0xff]  }
  0x87   : > { %1127 = vrot.lane.b32.xlu0 %v1078_v2, %s2779_s29  ;;  %v1081_v59 = vshrl.u32 %v2537_v30, 16  ;;  %v1084_v10 = vshll.u32 %v2537_v30, 16  ;;  %v433_v17 = vmul.f32 4.0, %v4144_v26  ;;  %v1079_v11 = vrot.slane %v1077_v49, 4 }
  0x88   : > { %966 = vrot.lane.b32.xlu1 %v946_v34, %s2775_s25  ;;  %v4182_v30 = vrot.slane %v3225_v27, 5  ;;  %v1348_v2 = vrot.slane %v3231_v54, 5  ;;  %v3304_v26 = vmul.f32 0.25, %v323_v47  ;;  %v700_v12 = vshrl.u32 %v3231_v54, 16 }
  0x89   : > { %v1083_v48 = vrot.slane %v1081_v59, 5  ;;  %v1086_v53 = vrot.slane %v1084_v10, 6  ;;  %v473_v41 = vsub.f32 %v313_v31, %v433_v17  ;;  %v2597_v1 = vunpack.c.2.s8 %v3299_v22 }
  0x8a   : > { %v1347_v29 = vrot.slane %v4182_v30, 4  ;;  %4183 = vst [vmem:[#allocation16_spill] sm:$0xff] %v3304_v26  ;;  %v2577_v49 = vunpack.c.0.s8 %v3299_v22  ;;  %v1223_v27 = vsel %vm3039_vm8, %v1214_v28, %v3295_v8  ;;  %v837_v31 = vrot.slane %v836_v35, 4 }
  0x8b   : > { %v3307_v6 = vor.u32 %v1086_v53, %v1083_v48  ;;  %1262 = vrot.lane.b32.xlu0 %v1213_v42, %s2780_s30  ;;  %v2377_v20 = vadd.f32 -1.0, %v473_v41  ;;  %v4145_v60 = vfloor.f32 %v3304_v26  ;;  %v702_v34 = vrot.slane %v700_v12, 4 }
  0x8c   : > { %v324_v59 = vcvt.s32.f32 %v2597_v1  ;;  %v314_v10 = vcvt.s32.f32 %v2577_v49  ;;  %v4184_v17 = vrot.slane %v3166_v14, 5  ;;  %v1412_v35 = vrot.slane %v3237_v0, 5 }
  0x8d   : > { %v1088_v54 = vsel %vm3039_vm8, %v1079_v11, %v3307_v6  ;;  %v3319_v40 = vpack.c.bf16 %v2377_v20, %v2377_v20  ;;  %v443_v42 = vmul.f32 4.0, %v4145_v60  ;;  %v2614_v48 = vunpack.c.3.s8 %v3074_v9 }
  0x8e   : > { %1129 = vrot.lane.b32.xlu1 %v1088_v54, %s2779_s29  ;;  %v1411_v28 = vrot.slane %v4184_v17, 4  ;;  %v1349_v53 = vsel %vm2888_vm2, %v1347_v29, %v1348_v2  ;;  %v3333_v41 = vmul.f32 0.25, %v324_v59  ;;  %v3335_v30 = vmul.f32 0.25, %v314_v10 }
  0x8f   : > { %1305 = vrot.lane.b32.xlu0 %v3260_v33, %s2781_s6  ;;  %v839_v11 = vshll.u32 %v3319_v40, 16  ;;  %v483_v12 = vsub.f32 %v323_v47, %v443_v42  ;;  %v703_v20 = vor.u32 %v702_v34, %v3247_v5  ;;  %v843_v1 = vshrl.u32 %v3319_v40, 16  ;;  %v3345_v47 = vld [vmem:[%s2829_s23 + $0x38] ss:$20 sps:$4 sm:$0xff]   ;;  %606 = vst.msk [vmem:[#allocation2 + $0x1c] sm:$0xf] %vm598_vm9, %v3319_v40 }
  0x90   : > { %4185 = vst [vmem:[#allocation17_spill] sm:$0xff] %v3333_v41  ;;  %4186 = vst [vmem:[#allocation18_spill] sm:$0xff] %v3335_v30  ;;  %v333_v49 = vcvt.s32.f32 %v2614_v48  ;;  %v1350_v54 = vrot.slane %v1348_v2, 4  ;;  %v4148_v33 = vfloor.f32 %v3333_v41  ;;  %v4147_v17 = vfloor.f32 %v3335_v30 }
  0x91   : > { %v841_v9 = vrot.slane %v839_v11, 5  ;;  %v2387_v29 = vadd.f32 -1.0, %v483_v12  ;;  %v1413_v60 = vsel %vm2888_vm2, %v1411_v28, %v1412_v35  ;;  %v845_v51 = vrot.slane %v843_v1, 4 }
  0x92   : > { %1264 = vrot.lane.b32.xlu1 %v1223_v27, %s2780_s30  ;;  %v373_v44 = vmul.f32 0.25, %v333_v49  ;;  %v1414_v2 = vrot.slane %v1412_v35, 4  ;;  %v444_v34 = vmul.f32 4.0, %v4148_v33  ;;  %v434_v27 = vmul.f32 4.0, %v4147_v17 }
  0x93   : > { %v842_v5 = vsel %vm2969_vm5, %v837_v31, %v841_v9  ;;  %1369 = vrot.lane.b32.xlu0 %v1349_v53, %s2774_s24  ;;  %v3354_v42 = vpack.c.bf16 %v2387_v29, %v2387_v29  ;;  %v704_v48 = vrot.slane %v703_v20, 4  ;;  %v2617_v32 = vunpack.c.0.s8 %v3345_v47 }
  0x94   : > { %v413_v11 = vfloor.f32 %v373_v44  ;;  %v484_v12 = vsub.f32 %v324_v59, %v444_v34  ;;  %v474_v1 = vsub.f32 %v314_v10, %v434_v27  ;;  %v2634_v31 = vunpack.c.3.s8 %v3093_v57 }
  0x95   : > { %v4151_v35 = vrot.slane %v3354_v42, 5  ;;  %v706_v53 = vshll.u32 %v3354_v42, 16  ;;  %v710_v17 = vshrl.u32 %v3354_v42, 16  ;;  %v846_v29 = vor.u32 %v845_v51, %v841_v9 }
  0x96   : > { %1307 = vrot.lane.b32.xlu1 %v842_v5, %s2781_s6  ;;  %v2388_v33 = vadd.f32 -1.0, %v484_v12  ;;  %v2378_v20 = vadd.f32 -1.0, %v474_v1  ;;  %v453_v44 = vmul.f32 4.0, %v413_v11  ;;  %v334_v59 = vcvt.s32.f32 %v2617_v32 }
  0x97   : > { %1434 = vrot.lane.b32.xlu0 %v1413_v60, %s2776_s26  ;;  %v1352_v57 = vsel %vm2888_vm2, %v1350_v54, %v4151_v35  ;;  %v708_v10 = vrot.slane %v706_v53, 5  ;;  %v712_v34 = vrot.slane %v710_v17, 4  ;;  %v343_v27 = vcvt.s32.f32 %v2634_v31 }
  0x98   : > { %v3368_v28 = vpack.c.bf16 %v2388_v33, %v2388_v33  ;;  %v3370_v30 = vpack.c.bf16 %v2378_v20, %v2378_v20  ;;  %v493_v41 = vsub.f32 %v333_v49, %v453_v44  ;;  %v374_v51 = vmul.f32 0.25, %v334_v59 }
  0x99   : > { %v4187_v60 = vrot.slane %v3319_v40, 5  ;;  %v709_v9 = vsel %vm2969_vm5, %v704_v48, %v708_v10  ;;  %v713_v54 = vor.u32 %v712_v34, %v708_v10  ;;  %v383_v12 = vmul.f32 0.25, %v343_v27  ;;  %v3379_v17 = vpop.permute.xlu0 %1361 }
  0x9a   : > { %1371 = vrot.lane.b32.xlu1 %v1352_v57, %s2774_s24  ;;  %v716_v33 = vshll.u32 %v3368_v28, 16  ;;  %v849_v49 = vshll.u32 %v3370_v30, 16  ;;  %v2397_v1 = vadd.f32 -1.0, %v493_v41  ;;  %v414_v31 = vfloor.f32 %v374_v51  ;;  %607 = vst.msk [vmem:[#allocation2 + $0x20] sm:$0xf] %vm598_vm9, %v3370_v30 }
  0x9b   : > { %v1416_v32 = vsel %vm2888_vm2, %v1414_v2, %v4187_v60  ;;  %742 = vrot.lane.b32.xlu0 %v709_v9, %s2777_s27  ;;  %v714_v53 = vrot.slane %v713_v54, 4  ;;  %v4188_v20 = vrot.slane %v3264_v63, 5  ;;  %v423_v2 = vfloor.f32 %v383_v12 }
  0x9c   : > { %v2637_v57 = vunpack.c.2.s8 %v3345_v47  ;;  %v3387_v48 = vrot.slane %v716_v33, 5  ;;  %v847_v10 = vrot.slane %v846_v29, 4  ;;  %v2528_v34 = vpack.c.bf16 %v2397_v1, %v2397_v1 }
  0x9d   : > { %v947_v44 = vrot.slane %v4188_v20, 4  ;;  %v454_v60 = vmul.f32 4.0, %v414_v31  ;;  %v463_v9 = vmul.f32 4.0, %v423_v2  ;;  %v3390_v35 = vadd.f32 %v423_v2, %v413_v11  ;;  %v3401_v11 = vpop.permute.xlu0 %1426 }
  0x9e   : > { %1436 = vrot.lane.b32.xlu1 %v1416_v32, %s2776_s26  ;;  %v344_v15 = vcvt.s32.f32 %v2637_v57  ;;  %v2578_v41 = vunpack.c.1.s8 %v3299_v22  ;;  %v719_v63 = vsel %vm2969_vm5, %v714_v53, %v3387_v48  ;;  %v3397_v51 = vrot.slane %v849_v49, 5  ;;  %v3399_v32 = vpop.permute.xlu1 %958 }
  0x9f   : > { %4189 = vst [vmem:[#allocation19_spill] sm:$0xff] %v3390_v35  ;;  %875 = vrot.lane.b32.xlu0 %v842_v5, %s2778_s28  ;;  %v948_v54 = vrot.slane %v2528_v34, 5  ;;  %v494_v29 = vsub.f32 %v334_v59, %v454_v60  ;;  %v503_v12 = vsub.f32 %v343_v27, %v463_v9  ;;  %v1226_v1 = vshrl.u32 %v2528_v34, 16 }
  0xa0   : > { %v384_v33 = vmul.f32 0.25, %v344_v15  ;;  %v1229_v57 = vshll.u32 %v2528_v34, 16  ;;  %v315_v35 = vcvt.s32.f32 %v2578_v41  ;;  %v3409_v59 = vsel %vm2969_vm5, %v847_v10, %v3397_v51 }
  0xa1   : > { %v949_v20 = vsel %vm2888_vm2, %v947_v44, %v948_v54  ;;  %v2398_v2 = vadd.f32 -1.0, %v494_v29  ;;  %v2407_v5 = vadd.f32 -1.0, %v503_v12  ;;  %v950_v53 = vrot.slane %v948_v54, 4 }
  0xa2   : > { %744 = vrot.lane.b32.xlu1 %v719_v63, %s2777_s27  ;;  %v424_v49 = vfloor.f32 %v384_v33  ;;  %v3414_v60 = vmul.f32 0.25, %v315_v35  ;;  %v1228_v63 = vrot.slane %v1226_v1, 5  ;;  %v1231_v29 = vrot.slane %v1229_v57, 6 }
  0xa3   : > { %968 = vrot.lane.b32.xlu0 %v949_v20, %s2775_s25  ;;  %v3412_v27 = vpack.c.bf16 %v2398_v2, %v2398_v2  ;;  %v2538_v44 = vpack.c.bf16 %v2407_v5, %v2407_v5  ;;  %v1089_v10 = vrot.slane %v3307_v6, 4  ;;  %v3423_v2 = vpop.permute.xlu1 %1363  ;;  %v720_v50 = vshrl.u32 %v3368_v28, 16 }
  0xa4   : > { %4190 = vst [vmem:[#allocation20_spill] sm:$0xff] %v3414_v60  ;;  %v464_v9 = vmul.f32 4.0, %v424_v49  ;;  %v3416_v34 = vadd.f32 %v424_v49, %v414_v31  ;;  %v853_v49 = vshrl.u32 %v3370_v30, 16  ;;  %v1232_v26 = vor.u32 %v1231_v29, %v1228_v63 }
  0xa5   : > { %v4156_v41 = vrot.slane %v3412_v27, 5  ;;  %v1091_v33 = vshrl.u32 %v2538_v44, 16  ;;  %v1094_v20 = vshll.u32 %v2538_v44, 16  ;;  %v1236_v1 = vshrl.u32 %v3412_v27, 16 }
  0xa6   : > { %4191 = vst [vmem:[#allocation21_spill] sm:$0xff] %v3416_v34  ;;  %877 = vrot.lane.b32.xlu1 %v3409_v59, %s2778_s28  ;;  %v504_v54 = vsub.f32 %v344_v15, %v464_v9  ;;  %v1239_v57 = vshll.u32 %v3412_v27, 16  ;;  %v4192_v15 = vfloor.f32 %v3414_v60  ;;  %v1224_v9 = vrot.slane %v3295_v8, 4 }
  0xa7   : > { %v3425_v5 = vpop.permute.xlu0 %956  ;;  %v952_v31 = vsel %vm2888_vm2, %v950_v53, %v4156_v41  ;;  %v1093_v12 = vrot.slane %v1091_v33, 5  ;;  %v1096_v6 = vrot.slane %v1094_v20, 6  ;;  %v2598_v41 = vunpack.c.3.s8 %v3299_v22 }
  0xa8   : > { %v2408_v34 = vadd.f32 -1.0, %v504_v54  ;;  %v435_v44 = vmul.f32 4.0, %v4192_v15  ;;  %v1238_v46 = vrot.slane %v1236_v1, 5  ;;  %v1241_v62 = vrot.slane %v1239_v57, 6 }
  0xa9   : > { %v1097_v55 = vor.u32 %v1096_v6, %v1093_v12  ;;  %v855_v60 = vrot.slane %v853_v49, 4  ;;  %v1233_v8 = vsel %vm3039_vm8, %v1224_v9, %v1232_v26  ;;  %v325_v63 = vcvt.s32.f32 %v2598_v41 }
  0xaa   : > { %970 = vrot.lane.b32.xlu1 %v952_v31, %s2775_s25  ;;  %v2539_v37 = vpack.c.bf16 %v2408_v34, %v2408_v34  ;;  %v475_v53 = vsub.f32 %v315_v35, %v435_v44  ;;  %v3441_v15 = vpop.permute.xlu1 %1428  ;;  %v1234_v34 = vrot.slane %v1232_v26, 4  ;;  %v3446_v1 = vor.u32 %v1241_v62, %v1238_v46 }
  0xab   : > { %v731_v56 = vpop.permute.xlu0 %730  ;;  %v1098_v33 = vsel %vm3039_vm8, %v1089_v10, %v1097_v55  ;;  %v1099_v22 = vrot.slane %v1097_v55, 4  ;;  %v856_v3 = vor.u32 %v855_v60, %v3397_v51  ;;  %v2618_v46 = vunpack.c.1.s8 %v3345_v47 }
  0xac   : > { %v1101_v20 = vshrl.u32 %v2539_v37, 16  ;;  %v1104_v54 = vshll.u32 %v2539_v37, 16  ;;  %1131 = vrot.lane.b32.xlu0 %v1098_v33, %s2779_s29  ;;  %v2379_v35 = vadd.f32 -1.0, %v475_v53  ;;  %v3450_v37 = vmul.f32 0.25, %v325_v63  ;;  %758 = vst.msk [vmem:[#allocation2] sm:$0xf] %vm757_vm10, %v731_v56 }
  0xad   : > { %v4193_v14 = vrot.slane %v3354_v42, 5  ;;  %v1354_v55 = vrot.slane %v3368_v28, 5  ;;  %v1243_v26 = vsel %vm3039_vm8, %v1234_v34, %v3446_v1  ;;  %v722_v60 = vrot.slane %v720_v50, 4  ;;  %v2756_v42 = vld [vmem:[%s4119_s1] sm:$0xff]  }
  0xae   : > { %v1103_v29 = vrot.slane %v1101_v20, 5  ;;  %v1106_v12 = vrot.slane %v1104_v54, 6  ;;  %v3448_v10 = vpack.c.bf16 %v2379_v35, %v2379_v35  ;;  %v405_v62 = vfloor.f32 %v3450_v37 }
  0xaf   : > { %v733_v31 = vpop.permute.xlu0 %732  ;;  %v1353_v56 = vrot.slane %v4193_v14, 4  ;;  %v857_v41 = vrot.slane %v856_v3, 4  ;;  %v335_v57 = vcvt.s32.f32 %v2618_v46  ;;  %v2638_v49 = vunpack.c.3.s8 %v3345_v47 }
  0xb0   : > { %v3470_v61 = vor.u32 %v1106_v12, %v1103_v29  ;;  %759 = vst.msk [vmem:[#allocation2 + $0x4] sm:$0xf] %vm757_vm10, %v733_v31  ;;  %1266 = vrot.lane.b32.xlu0 %v1233_v8, %s2780_s30  ;;  %v859_v13 = vshll.u32 %v3448_v10, 16  ;;  %v445_v51 = vmul.f32 4.0, %v405_v62  ;;  %v4194_v44 = vrot.slane %v3319_v40, 5  ;;  %v2757_v40 = vld [vmem:[%s4119_s1 + $0x8] sm:$0xff]  }
  0xb1   : > { %v1418_v53 = vrot.slane %v3370_v30, 5  ;;  %v1355_v33 = vsel %vm2888_vm2, %v1353_v56, %v1354_v55  ;;  %v375_v54 = vmul.f32 0.25, %v335_v57  ;;  %v345_v8 = vcvt.s32.f32 %v2638_v49 }
  0xb2   : > { %v1108_v7 = vsel %vm3039_vm8, %v1099_v22, %v3470_v61  ;;  %v3496_v28 = vrot.slane %v859_v13, 5  ;;  %v485_v6 = vsub.f32 %v325_v63, %v445_v51  ;;  %v1417_v9 = vrot.slane %v4194_v44, 4 }
  0xb3   : > { %v864_v0 = vpop.permute.xlu1 %863  ;;  %1133 = vrot.lane.b32.xlu1 %v1108_v7, %s2779_s29  ;;  %v2782_v34 = vmov 0.0   ;;  %v385_v35 = vmul.f32 0.25, %v345_v8  ;;  %v1356_v63 = vrot.slane %v1354_v55, 4  ;;  %v1420_v29 = vrot.slane %v1418_v53, 4  ;;  %v2758_v7 = vld [vmem:[%s4119_s1 + $0x10] sm:$0xff]  }
  0xb4   : > { %891 = vst.msk [vmem:[#allocation2] sm:$0xf] %vm890_vm11, %v864_v0  ;;  %1309 = vrot.lane.b32.xlu0 %v3409_v59, %s2781_s6  ;;  %2655 = vmatprep.subr.bf16.mxu0 %v2782_v34  ;;  %v2389_v47 = vadd.f32 -1.0, %v485_v6  ;;  %v723_v59 = vor.u32 %v722_v60, %v3387_v48  ;;  %v3519_v30 = vsel %vm2969_vm5, %v857_v41, %v3496_v28  ;;  %v1291_v46 = vshrl.u32 %v3448_v10, 16 }
  0xb5   : > { %984 = vst.msk [vmem:[#allocation2] sm:$0xf] %vm983_vm12, %v3425_v5  ;;  %2685 = vmatprep.subr.bf16.mxu1 %v2782_v34  ;;  %2656 = vmatpush3.bf16.msra.mxu0 %v2756_v42  ;;  %v415_v5 = vfloor.f32 %v375_v54  ;;  %v1419_v22 = vsel %vm2888_vm2, %v1417_v9, %v1418_v53  ;;  %v425_v31 = vfloor.f32 %v385_v35  ;;  %v1421_v14 = vrot.slane %v3448_v10, 5  ;;  %v2759_v53 = vld [vmem:[%s4119_s1 + $0x18] sm:$0xff]  }
  0xb6   : > { %2657 = vmatprep.subr.bf16.mxu0 %v2782_v34  ;;  %v3525_v48 = vpack.c.bf16 %v2389_v47, %v2389_v47  ;;  %v724_v3 = vrot.slane %v723_v59, 4  ;;  %2665 = vmatprep.mubr.msk.bf16.mxu0 %vm2783_vm14, %v2782_v34  ;;  %v4195_v49 = vrot.slane %v3412_v27, 5  ;;  %v1293_v9 = vrot.slane %v1291_v46, 4 }
  0xb7   : > { %v866_v20 = vpop.permute.xlu1 %865  ;;  %1268 = vrot.lane.b32.xlu1 %v1243_v26, %s2780_s30  ;;  %v455_v12 = vmul.f32 4.0, %v415_v5  ;;  %v465_v55 = vmul.f32 4.0, %v425_v31  ;;  %v3539_v0 = vadd.f32 %v425_v31, %v415_v5  ;;  %2687 = vmatprep.mubr.msk.bf16.mxu1 %vm2783_vm14, %v2782_v34  ;;  %v1109_v46 = vrot.slane %v3470_v61, 4 }
  0xb8   : > { %892 = vst.msk [vmem:[#allocation2 + $0x4] sm:$0xf] %vm890_vm11, %v866_v20  ;;  %1373 = vrot.lane.b32.xlu0 %v1355_v33, %s2774_s24  ;;  %v726_v50 = vshll.u32 %v3525_v48, 16  ;;  %v953_v6 = vrot.slane %v4195_v49, 4  ;;  %v2760_v33 = vld [vmem:[%s4119_s1 + $0x20] ss:$0 sps:$4 sm:$0xff]   ;;  %v1422_v20 = vsel %vm2888_vm2, %v1420_v29, %v1421_v14  ;;  %v1294_v35 = vor.u32 %v1293_v9, %v3496_v28 }
  0xb9   : > { %985 = vst.msk [vmem:[#allocation2 + $0x4] sm:$0xf] %vm983_vm12, %v3399_v32  ;;  %v1357_v32 = vrot.slane %v3525_v48, 5  ;;  %2658 = vmatpush3.bf16.msra.mxu0 %v2757_v40  ;;  %v495_v56 = vsub.f32 %v335_v57, %v455_v12  ;;  %v505_v41 = vsub.f32 %v345_v8, %v465_v55 }
  0xba   : > { %2659 = vmatprep.subr.bf16.mxu0 %v2782_v34  ;;  %v728_v51 = vrot.slane %v726_v50, 5  ;;  %v1244_v50 = vrot.slane %v3446_v1, 4 }
  0xbb   : > { %1311 = vrot.lane.b32.xlu1 %v3519_v30, %s2781_s6  ;;  %v1358_v26 = vsel %vm2888_vm2, %v1356_v63, %v1357_v32  ;;  %v2399_v42 = vadd.f32 -1.0, %v495_v56  ;;  %v2409_v8 = vadd.f32 -1.0, %v505_v41  ;;  %v1359_v1 = vrot.slane %v1357_v32, 4 }
  0xbc   : > { %v1120_v13 = vpop.permute.xlu0 %1119  ;;  %1438 = vrot.lane.b32.xlu0 %v1419_v22, %s2776_s26  ;;  %v729_v57 = vsel %vm2969_vm5, %v724_v3, %v728_v51  ;;  %v1549_v22 = vsel %vm1547_vm0, %v2760_v33, 0  ;;  %v1423_v51 = vrot.slane %v1421_v14, 4 }
  0xbd   : > { %1147 = vst.msk [vmem:[#allocation2] sm:$0xf] %vm1146_vm13, %v1120_v13  ;;  %2660 = vmatpush3.bf16.msra.mxu0 %v2758_v7  ;;  %v2530_v54 = vpack.c.bf16 %v2399_v42, %v2399_v42  ;;  %v2540_v59 = vpack.c.bf16 %v2409_v8, %v2409_v8 }
  0xbe   : > { %v1122_v60 = vpop.permute.xlu1 %1121  ;;  %2661 = vmatprep.subr.bf16.mxu0 %v2782_v34 }
  0xbf   : > { %1148 = vst.msk [vmem:[#allocation2 + $0x4] sm:$0xf] %vm1146_vm13, %v1122_v60  ;;  %1375 = vrot.lane.b32.xlu1 %v1358_v26, %s2774_s24  ;;  %v954_v47 = vrot.slane %v2530_v54, 5  ;;  %v1246_v40 = vshrl.u32 %v2530_v54, 16  ;;  %v1249_v5 = vshll.u32 %v2530_v54, 16  ;;  %v1111_v12 = vshrl.u32 %v2540_v59, 16 }
  0xc0   : > { %v1255_v44 = vpop.permute.xlu0 %1254  ;;  %746 = vrot.lane.b32.xlu0 %v729_v57, %s2777_s27  ;;  %v1114_v31 = vshll.u32 %v2540_v59, 16  ;;  %v1295_v26 = vrot.slane %v1294_v35, 4 }
  0xc1   : > { %1282 = vst.msk [vmem:[#allocation2] sm:$0xf] %vm1281_vm15, %v1255_v44  ;;  %2662 = vmatpush3.bf16.msra.mxu0 %v2759_v53  ;;  %v955_v29 = vsel %vm2888_vm2, %v953_v6, %v954_v47  ;;  %v1248_v3 = vrot.slane %v1246_v40, 5  ;;  %v1251_v28 = vrot.slane %v1249_v5, 6  ;;  %v1113_v7 = vrot.slane %v1111_v12, 5 }
  0xc2   : > { %v1257_v27 = vpop.permute.xlu1 %1256  ;;  %2663 = vmatprep.subr.bf16.mxu0 %v2782_v34  ;;  %v1116_v56 = vrot.slane %v1114_v31, 6 }
  0xc3   : > { %1283 = vst.msk [vmem:[#allocation2 + $0x4] sm:$0xf] %vm1281_vm15, %v1257_v27  ;;  %1440 = vrot.lane.b32.xlu1 %v1422_v20, %s2776_s26  ;;  %v1252_v55 = vor.u32 %v1251_v28, %v1248_v3 }
  0xc4   : > { %v1298_v63 = vpop.permute.xlu0 %1297  ;;  %972 = vrot.lane.b32.xlu0 %v955_v29, %s2775_s25  ;;  %v1117_v61 = vor.u32 %v1116_v56, %v1113_v7  ;;  %s2727_s25 = smul.u32 36, %s4235_s19 }
  0xc5   : > { %1325 = vst.msk [vmem:[#allocation2] sm:$0xf] %vm1324_vm1, %v1298_v63  ;;  %2664 = vmatpush3.bf16.msra.mxu0 %v1549_v22 }
  0xc6   : > { %1389 = vst.msk [vmem:[#allocation2] sm:$0xf] %vm1388_vm3, %v3379_v17  ;;  %v1300_v13 = vpop.permute.xlu1 %1299  ;;  %s4005_s19 = scalar_lea.vmem %s4123_s5, %s2727_s25 }
  0xc7   : > { %1454 = vst.msk [vmem:[#allocation2] sm:$0xf] %vm1453_vm4, %v3401_v11  ;;  %879 = vrot.lane.b32.xlu1 %v3519_v30, %s2778_s28  ;;  %v1253_v11 = vsel %vm3039_vm8, %v1244_v50, %v1252_v55  ;;  %v1118_v30 = vsel %vm3039_vm8, %v1109_v46, %v1117_v61 }
  0xc8   : > { %1326 = vst.msk [vmem:[#allocation2 + $0x4] sm:$0xf] %vm1324_vm1, %v1300_v13  ;;  %v735_v17 = vpop.permute.xlu0 %734  ;;  %1270 = vrot.lane.b32.xlu0 %v1253_v11, %s2780_s30 }
  0xc9   : > { %1390 = vst.msk [vmem:[#allocation2 + $0x4] sm:$0xf] %vm1388_vm3, %v3423_v2  ;;  %v4196_v2 = vrot.slane %v2950_v4, 5 }
  0xca   : > { %1455 = vst.msk [vmem:[#allocation2 + $0x4] sm:$0xf] %vm1453_vm4, %v3441_v15  ;;  %v1296_v15 = vsel %vm2969_vm5, %v1295_v26, %v2957_v16  ;;  %v1425_v16 = vsel %vm2888_vm2, %v1423_v51, %v1424_v38  ;;  %v4199_v51 = vfloor.f32 %v2854_v24  ;;  %vm1823_vm5 = vcmask 1044480  }
  0xcb   : > { %760 = vst.msk [vmem:[#allocation2 + $0x8] sm:$0xf] %vm757_vm10, %v735_v17  ;;  %1135 = vrot.lane.b32.xlu1 %v1118_v30, %s2779_s29  ;;  %v1360_v48 = vsel %vm2888_vm2, %v1359_v1, %v4196_v2  ;;  %v4197_v30 = vfloor.f32 %v2842_v18  ;;  %vm1714_vm2 = vcmask 1040384  }
  0xcc   : > { %v868_v32 = vpop.permute.xlu0 %867  ;;  %1377 = vrot.lane.b32.xlu0 %v1360_v48, %s2774_s24  ;;  %v4198_v48 = vfloor.f32 %v2844_v19  ;;  %v1765_v38 = vrot.slane %v4199_v51, 7  ;;  %v4202_v19 = vfloor.f32 %v2935_v43 }
  0xcd   : > { %v737_v60 = vpop.permute.xlu1 %736  ;;  %893 = vst.msk [vmem:[#allocation2 + $0x8] sm:$0xf] %vm890_vm11, %v868_v32  ;;  %v1715_v2 = vrot.slane %v4197_v30, 7 }
  0xce   : > { %761 = vst.msk [vmem:[#allocation2 + $0xc] sm:$0xf] %vm757_vm10, %v737_v60  ;;  %v1716_v32 = vrot.slane %v4198_v48, 7 }
  0xcf   : > { %1313 = vrot.lane.b32.xlu1 %v1296_v15, %s2781_s6  ;;  %v1744_v18 = vadd.f32 %v1715_v2, %v3005_v36 }
  0xd0   : > { %v961_v4 = vpop.permute.xlu0 %960  ;;  %v1717_v24 = vsel %vm1714_vm2, %v1715_v2, %v1716_v32  ;;  %v4211_v2 = vld [vmem:[#allocation7_spill] sm:$0xff] }
  0xd1   : > { %v2761_v42 = vld [vmem:[#allocation2] sm:$0xff]   ;;  %v870_v45 = vpop.permute.xlu1 %869  ;;  %986 = vst.msk [vmem:[#allocation2 + $0x8] sm:$0xf] %vm983_vm12, %v961_v4  ;;  %v4200_v4 = vfloor.f32 %v2856_v25 }
  0xd2   : > { %894 = vst.msk [vmem:[#allocation2 + $0xc] sm:$0xf] %vm890_vm11, %v870_v45  ;;  %2666 = vmatmul.mubr.msk.bf16.vlgmr.msra.gmra.mrb[0].mxu0 %vm1531_vm6, %v2761_v42 }
  0xd3   : > { %2669 = vmatprep.mubr.msk.bf16.mxu0 %vm2783_vm14, %v2782_v34  ;;  %1442 = vrot.lane.b32.xlu1 %v1425_v16, %s2776_s26  ;;  %v1718_v42 = vrot.slane %v4200_v4, 7  ;;  %v4201_v16 = vfloor.f32 %v2852_v23 }
  0xd5   : > { %v963_v52 = vpop.permute.xlu1 %962  ;;  %v1764_v45 = vrot.slane %v4201_v16, 7  ;;  %v1719_v23 = vsel %vm1714_vm2, %v1716_v32, %v1718_v42 }
  0xd6   : > { %987 = vst.msk [vmem:[#allocation2 + $0xc] sm:$0xf] %vm983_vm12, %v963_v52  ;;  %v1767_v52 = vrot.slane %v4202_v19, 7  ;;  %v1746_v43 = vadd.f32 %v1719_v23, %v3019_v21 }
  0xd7   : > { %v1766_v25 = vsel %vm1714_vm2, %v1764_v45, %v1765_v38 }
  0xd8   : > { %v1124_v10 = vpop.permute.xlu0 %1123 }
  0xd9   : > { %1149 = vst.msk [vmem:[#allocation2 + $0x8] sm:$0xf] %vm1146_vm13, %v1124_v10  ;;  %v1126_v58 = vpop.permute.xlu1 %1125 }
  0xda   : > { %1150 = vst.msk [vmem:[#allocation2 + $0xc] sm:$0xf] %vm1146_vm13, %v1126_v58  ;;  %v1745_v58 = vadd.f32 %v1717_v24, %v3009_v39  ;;  %v1910_v39 = vld [vmem:[%s4120_s2] sm:$0xf] }
  0xdc   : > { %v1259_v14 = vpop.permute.xlu0 %1258  ;;  %v1794_v36 = vadd.f32 %v1766_v25, %v1745_v58  ;;  %v4213_v58 = vld [vmem:[#allocation11_spill] sm:$0xff] }
  0xdd   : > { %1284 = vst.msk [vmem:[#allocation2 + $0x8] sm:$0xf] %vm1281_vm15, %v1259_v14  ;;  %v1261_v41 = vpop.permute.xlu1 %1260  ;;  %v1793_v14 = vadd.f32 %v1764_v45, %v1744_v18 }
  0xde   : > { %1285 = vst.msk [vmem:[#allocation2 + $0xc] sm:$0xf] %vm1281_vm15, %v1261_v41 }
  0xe0   : > { %v1302_v57 = vpop.permute.xlu0 %1301 }
  0xe1   : > { %1327 = vst.msk [vmem:[#allocation2 + $0x8] sm:$0xf] %vm1324_vm1, %v1302_v57  ;;  %v1304_v49 = vpop.permute.xlu1 %1303  ;;  %v1803_v57 = vmul.f32 0.03125, %v1793_v14  ;;  %v4215_v14 = vld [vmem:[#allocation12_spill] sm:$0xff] }
  0xe2   : > { %1328 = vst.msk [vmem:[#allocation2 + $0xc] sm:$0xf] %vm1324_vm1, %v1304_v49 }
  0xe4   : > { %v1366_v6 = vpop.permute.xlu0 %1365 }
  0xe5   : > { %1391 = vst.msk [vmem:[#allocation2 + $0x8] sm:$0xf] %vm1388_vm3, %v1366_v6  ;;  %v1768_v6 = vsel %vm1714_vm2, %v1765_v38, %v1767_v52  ;;  %v4212_v38 = vld [vmem:[#allocation8_spill] sm:$0xff] }
  0xe8   : > { %v1431_v44 = vpop.permute.xlu0 %1430 }
  0xe9   : > { %1456 = vst.msk [vmem:[#allocation2 + $0x8] sm:$0xf] %vm1453_vm4, %v1431_v44  ;;  %v1804_v44 = vmul.f32 0.03125, %v1794_v36 }
  0xea   : > { %v1368_v9 = vpop.permute.xlu1 %1367 }
  0xeb   : > { %1392 = vst.msk [vmem:[#allocation2 + $0xc] sm:$0xf] %vm1388_vm3, %v1368_v9  ;;  %v1824_v9 = vrot.slane %v1803_v57, 3  ;;  %v4217_v57 = vld [vmem:[#allocation16_spill] sm:$0xff] }
  0xec   : > { %v739_v53 = vpop.permute.xlu0 %738  ;;  %v4218_v23 = vfloor.f32 %v4217_v57 }
  0xed   : > { %762 = vst.msk [vmem:[#allocation2 + $0x10] sm:$0xf] %vm757_vm10, %v739_v53 }
  0xee   : > { %v1433_v33 = vpop.permute.xlu1 %1432 }
  0xef   : > { %1457 = vst.msk [vmem:[#allocation2 + $0xc] sm:$0xf] %vm1453_vm4, %v1433_v33  ;;  %v1795_v33 = vadd.f32 %v1768_v6, %v1746_v43  ;;  %v4219_v43 = vld [vmem:[#allocation15_spill] sm:$0xff] }
  0xf0   : > { %v872_v20 = vpop.permute.xlu0 %871  ;;  %v4220_v6 = vfloor.f32 %v4219_v43 }
  0xf1   : > { %895 = vst.msk [vmem:[#allocation2 + $0x10] sm:$0xf] %vm890_vm11, %v872_v20  ;;  %v1928_v20 = vsel %vm1547_vm0, %v1910_v39, 0  ;;  %v4221_v39 = vld [vmem:[#allocation13_spill] sm:$0xff] }
  0xf2   : > { %v741_v54 = vpop.permute.xlu1 %740  ;;  %2686 = vmatpush3.bf16.msra.mxu1 %v1928_v20 }
  0xf3   : > { %763 = vst.msk [vmem:[#allocation2 + $0x14] sm:$0xf] %vm757_vm10, %v741_v54  ;;  %v1825_v54 = vrot.slane %v1804_v44, 3  ;;  %v1775_v44 = vrot.slane %v4220_v6, 7 }
  0xf4   : > { %v965_v8 = vpop.permute.xlu0 %964 }
  0xf5   : > { %988 = vst.msk [vmem:[#allocation2 + $0x10] sm:$0xf] %vm983_vm12, %v965_v8  ;;  %v1805_v8 = vmul.f32 0.03125, %v1795_v33 }
  0xf6   : > { %v874_v27 = vpop.permute.xlu1 %873  ;;  %v2762_v47 = vld [vmem:[#allocation2 + $0x8] sm:$0xff]  }
  0xf7   : > { %896 = vst.msk [vmem:[#allocation2 + $0x14] sm:$0xf] %vm890_vm11, %v874_v27  ;;  %2670 = vmatmul.mubr.msk.bf16.gmra.mrb[4].mxu0 %vm1531_vm6, %v2762_v47  ;;  %v3697_v27 = vsel %vm1823_vm5, %v1824_v9, %v1825_v54 }
  0xf8   : > { %2673 = vmatprep.mubr.msk.bf16.mxu0 %vm2783_vm14, %v2782_v34 }
  0xf9   : > { %v1128_v59 = vpop.permute.xlu0 %1127 }
  0xfa   : > { %v967_v40 = vpop.permute.xlu1 %966  ;;  %1151 = vst.msk [vmem:[#allocation2 + $0x10] sm:$0xf] %vm1146_vm13, %v1128_v59  ;;  %v1827_v59 = vrot.slane %v1805_v8, 3 }
  0xfb   : > { %989 = vst.msk [vmem:[#allocation2 + $0x14] sm:$0xf] %vm983_vm12, %v967_v40 }
  0xfd   : > { %v1263_v5 = vpop.permute.xlu0 %1262 }
  0xfe   : > { %1286 = vst.msk [vmem:[#allocation2 + $0x10] sm:$0xf] %vm1281_vm15, %v1263_v5  ;;  %v3700_v5 = vsel %vm1823_vm5, %v1825_v54, %v1827_v59 }
 0x100   : > { %v1130_v35 = vpop.permute.xlu1 %1129 }
 0x101   : > { %1152 = vst.msk [vmem:[#allocation2 + $0x14] sm:$0xf] %vm1146_vm13, %v1130_v35  ;;  %v1306_v63 = vpop.permute.xlu0 %1305 }
 0x102   : > { %1329 = vst.msk [vmem:[#allocation2 + $0x10] sm:$0xf] %vm1324_vm1, %v1306_v63 }
 0x104   : > { %v1265_v22 = vpop.permute.xlu1 %1264 }
 0x105   : > { %1287 = vst.msk [vmem:[#allocation2 + $0x14] sm:$0xf] %vm1281_vm15, %v1265_v22  ;;  %v1370_v29 = vpop.permute.xlu0 %1369 }
 0x106   : > { %1393 = vst.msk [vmem:[#allocation2 + $0x10] sm:$0xf] %vm1388_vm3, %v1370_v29 }
 0x108   : > { %v1308_v12 = vpop.permute.xlu1 %1307 }
 0x109   : > { %1330 = vst.msk [vmem:[#allocation2 + $0x14] sm:$0xf] %vm1324_vm1, %v1308_v12  ;;  %v1435_v31 = vpop.permute.xlu0 %1434 }
 0x10a   : > { %1458 = vst.msk [vmem:[#allocation2 + $0x10] sm:$0xf] %vm1453_vm4, %v1435_v31 }
 0x10c   : > { %v1372_v3 = vpop.permute.xlu1 %1371 }
 0x10d   : > { %1394 = vst.msk [vmem:[#allocation2 + $0x14] sm:$0xf] %vm1388_vm3, %v1372_v3  ;;  %v743_v50 = vpop.permute.xlu0 %742 }
 0x10e   : > { %764 = vst.msk [vmem:[#allocation2 + $0x18] sm:$0xf] %vm757_vm10, %v743_v50  ;;  %v4203_v50 = vld [vmem:[#allocation5_spill] sm:$0xff] }
 0x110   : > { %v1437_v28 = vpop.permute.xlu1 %1436 }
 0x111   : > { %1459 = vst.msk [vmem:[#allocation2 + $0x14] sm:$0xf] %vm1453_vm4, %v1437_v28  ;;  %v876_v13 = vpop.permute.xlu0 %875  ;;  %v4204_v28 = vfloor.f32 %v4203_v50 }
 0x112   : > { %897 = vst.msk [vmem:[#allocation2 + $0x18] sm:$0xf] %vm890_vm11, %v876_v13 }
 0x113   : > { %v1720_v13 = vrot.slane %v4204_v28, 7  ;;  %v4225_v28 = vld [vmem:[#allocation18_spill] sm:$0xff] }
 0x114   : > { %v745_v46 = vpop.permute.xlu1 %744 }
 0x115   : > { %765 = vst.msk [vmem:[#allocation2 + $0x1c] sm:$0xf] %vm757_vm10, %v745_v46  ;;  %v969_v7 = vpop.permute.xlu0 %968  ;;  %v4205_v46 = vld [vmem:[#allocation6_spill] sm:$0xff]  ;;  %v1721_v30 = vsel %vm1714_vm2, %v1718_v42, %v1720_v13 }
 0x116   : > { %990 = vst.msk [vmem:[#allocation2 + $0x18] sm:$0xf] %vm983_vm12, %v969_v7  ;;  %v4206_v7 = vfloor.f32 %v4205_v46  ;;  %v1747_v48 = vadd.f32 %v1721_v30, %v4211_v2  ;;  %v1624_v2 = vlaneseq }
 0x118   : > { %v878_v56 = vpop.permute.xlu1 %877  ;;  %v2763_v55 = vld [vmem:[#allocation2 + $0x10] sm:$0xff]  }
 0x119   : > { %898 = vst.msk [vmem:[#allocation2 + $0x1c] sm:$0xf] %vm890_vm11, %v878_v56  ;;  %2674 = vmatmul.mubr.msk.bf16.gmra.mrb[8].mxu0 %vm1531_vm6, %v2763_v55  ;;  %v1769_v56 = vrot.slane %v4206_v7, 7  ;;  %v4207_v55 = vld [vmem:[#allocation10_spill] sm:$0xff]  ;;  %v1730_v7 = vrot.slane %v405_v62, 7  ;;  %v3767_v62 = vshrl.u32 %v1624_v2, 7 }
 0x11a   : > { %2677 = vmatprep.mubr.msk.bf16.mxu0 %vm2783_vm14, %v2782_v34 }
 0x11b   : > { %v1770_v32 = vsel %vm1714_vm2, %v1767_v52, %v1769_v56  ;;  %v4214_v52 = vfloor.f32 %v4213_v58 }
 0x11c   : > { %v971_v1 = vpop.permute.xlu1 %970  ;;  %v1796_v51 = vadd.f32 %v1770_v32, %v1747_v48  ;;  %v4230_v32 = vld [vmem:[#allocation21_spill] sm:$0xff] }
 0x11d   : > { %991 = vst.msk [vmem:[#allocation2 + $0x1c] sm:$0xf] %vm983_vm12, %v971_v1  ;;  %v4208_v1 = vfloor.f32 %v4207_v55  ;;  %v1724_v25 = vrot.slane %v4214_v52, 7  ;;  %v1623_v52 = vld [vmem:[%s4121_s3] sm:$0xff] }
 0x11e   : > { %v1132_v17 = vpop.permute.xlu0 %1131  ;;  %v1806_v18 = vmul.f32 0.03125, %v1796_v51 }
 0x11f   : > { %1153 = vst.msk [vmem:[#allocation2 + $0x18] sm:$0xf] %vm1146_vm13, %v1132_v17  ;;  %v1722_v17 = vrot.slane %v4208_v1, 7 }
 0x120   : > { %v1829_v45 = vrot.slane %v1806_v18, 3 }
 0x121   : > { %v1725_v9 = vsel %vm1714_vm2, %v1722_v17, %v1724_v25 }
 0x122   : > { %v1267_v61 = vpop.permute.xlu0 %1266 }
 0x123   : > { %1288 = vst.msk [vmem:[#allocation2 + $0x18] sm:$0xf] %vm1281_vm15, %v1267_v61  ;;  %v4209_v61 = vld [vmem:[#allocation9_spill] sm:$0xff] }
 0x125   : > { %v1134_v26 = vpop.permute.xlu1 %1133 }
 0x126   : > { %1154 = vst.msk [vmem:[#allocation2 + $0x1c] sm:$0xf] %vm1146_vm13, %v1134_v26  ;;  %v1310_v11 = vpop.permute.xlu0 %1309  ;;  %v4210_v26 = vfloor.f32 %v4209_v61  ;;  %v4229_v61 = vld [vmem:[#allocation19_spill] sm:$0xff] }
 0x127   : > { %1331 = vst.msk [vmem:[#allocation2 + $0x18] sm:$0xf] %vm1324_vm1, %v1310_v11 }
 0x128   : > { %v1771_v11 = vrot.slane %v4210_v26, 7 }
 0x129   : > { %v1269_v15 = vpop.permute.xlu1 %1268 }
 0x12a   : > { %1289 = vst.msk [vmem:[#allocation2 + $0x1c] sm:$0xf] %vm1281_vm15, %v1269_v15  ;;  %v1374_v60 = vpop.permute.xlu0 %1373  ;;  %v1723_v15 = vsel %vm1714_vm2, %v1720_v13, %v1722_v17  ;;  %v1772_v4 = vsel %vm1714_vm2, %v1769_v56, %v1771_v11  ;;  %v4226_v13 = vfloor.f32 %v4225_v28  ;;  %v4227_v56 = vld [vmem:[#allocation20_spill] sm:$0xff] }
 0x12b   : > { %1395 = vst.msk [vmem:[#allocation2 + $0x18] sm:$0xf] %vm1388_vm3, %v1374_v60  ;;  %v1748_v60 = vadd.f32 %v1723_v15, %v4212_v38  ;;  %v4228_v55 = vfloor.f32 %v4227_v56 }
 0x12c   : > { %v1777_v46 = vrot.slane %v4226_v13, 7 }
 0x12d   : > { %v1312_v10 = vpop.permute.xlu1 %1311  ;;  %v1797_v16 = vadd.f32 %v1772_v4, %v1748_v60  ;;  %v1779_v1 = vrot.slane %v4228_v55, 7 }
 0x12e   : > { %1332 = vst.msk [vmem:[#allocation2 + $0x1c] sm:$0xf] %vm1324_vm1, %v1312_v10  ;;  %v1439_v41 = vpop.permute.xlu0 %1438  ;;  %v3728_v10 = vsel %vm1823_vm5, %v1827_v59, %v1829_v45 }
 0x12f   : > { %1460 = vst.msk [vmem:[#allocation2 + $0x18] sm:$0xf] %vm1453_vm4, %v1439_v41  ;;  %v1807_v19 = vmul.f32 0.03125, %v1797_v16  ;;  %v4216_v41 = vfloor.f32 %v4215_v14  ;;  %v1780_v51 = vsel %vm1714_vm2, %v1777_v46, %v1779_v1  ;;  %v4232_v14 = vld [vmem:[#allocation3_spill] sm:$0xff] }
 0x131   : > { %v1376_v49 = vpop.permute.xlu1 %1375  ;;  %v1831_v24 = vrot.slane %v1807_v19, 3  ;;  %v1773_v36 = vrot.slane %v4216_v41, 7  ;;  %v4233_v41 = vfloor.f32 %v4232_v14 }
 0x132   : > { %1396 = vst.msk [vmem:[#allocation2 + $0x1c] sm:$0xf] %vm1388_vm3, %v1376_v49  ;;  %v747_v53 = vpop.permute.xlu0 %746  ;;  %v1726_v49 = vrot.slane %v4218_v23, 7  ;;  %v1661_v23 = vsub.s32 2, %v3767_v62 }
 0x133   : > { %766 = vst.msk [vmem:[#allocation2 + $0x20] sm:$0xf] %vm757_vm10, %v747_v53  ;;  %v3731_v42 = vsel %vm1823_vm5, %v1829_v45, %v1831_v24  ;;  %v1749_v53 = vadd.f32 %v1725_v9, %v4221_v39  ;;  %v1774_v33 = vsel %vm1714_vm2, %v1771_v11, %v1773_v36  ;;  %v1778_v11 = vsel %vm1714_vm2, %v1775_v44, %v1777_v46 }
 0x134   : > { %v1727_v20 = vsel %vm1714_vm2, %v1724_v25, %v1726_v49  ;;  %v1626_v45 = vsub.s32 0, %v3767_v62  ;;  %v1639_v25 = vsub.s32 1, %v3767_v62  ;;  %v1683_v9 = vsub.s32 3, %v3767_v62 }
 0x135   : > { %v1441_v21 = vpop.permute.xlu1 %1440  ;;  %v1798_v54 = vadd.f32 %v1774_v33, %v1749_v53  ;;  %v3799_v33 = vrot.slane %v1623_v52, %v1661_v23 }
 0x136   : > { %1461 = vst.msk [vmem:[#allocation2 + $0x1c] sm:$0xf] %vm1453_vm4, %v1441_v21  ;;  %v973_v47 = vpop.permute.xlu0 %972  ;;  %v4222_v21 = vld [vmem:[#allocation14_spill] sm:$0xff]  ;;  %v3785_v57 = vrot.slane %v1623_v52, %v1626_v45  ;;  %v3791_v43 = vrot.slane %v1623_v52, %v1639_v25 }
 0x137   : > { %v1750_v8 = vadd.f32 %v1727_v20, %v4222_v21  ;;  %v1808_v59 = vmul.f32 0.03125, %v1798_v54 }
 0x139   : > { %v880_v40 = vpop.permute.xlu1 %879 }
 0x13a   : > { %899 = vst.msk [vmem:[#allocation2 + $0x20] sm:$0xf] %vm890_vm11, %v880_v40  ;;  %v1271_v35 = vpop.permute.xlu0 %1270 }
 0x13b   : > { %992 = vst.msk [vmem:[#allocation2 + $0x20] sm:$0xf] %vm983_vm12, %v973_v47  ;;  %v1776_v47 = vsel %vm1714_vm2, %v1773_v36, %v1775_v44  ;;  %v1781_v36 = vrot.slane %v4233_v41, 7 }
 0x13c   : > { %v1799_v40 = vadd.f32 %v1776_v47, %v1750_v8 }
 0x13d   : > { %v1136_v63 = vpop.permute.xlu1 %1135  ;;  %v2764_v22 = vld [vmem:[#allocation2 + $0x18] sm:$0xff]   ;;  %v1782_v39 = vsel %vm1714_vm2, %v1779_v1, %v1781_v36 }
 0x13e   : > { %1155 = vst.msk [vmem:[#allocation2 + $0x20] sm:$0xf] %vm1146_vm13, %v1136_v63  ;;  %2678 = vmatmul.mubr.msk.bf16.gmra.mrb[12].mxu0 %vm1531_vm6, %v2764_v22  ;;  %v1378_v29 = vpop.permute.xlu0 %1377  ;;  %v1809_v63 = vmul.f32 0.03125, %v1799_v40  ;;  %v3805_v40 = vrot.slane %v1623_v52, %v1683_v9  ;;  %vm1911_vm13 = vcmask 64512  }
 0x13f   : > { %1290 = vst.msk [vmem:[#allocation2 + $0x20] sm:$0xf] %vm1281_vm15, %v1271_v35  ;;  %2681 = vmatprep.mubr.msk.bf16.mxu0 %vm2783_vm14, %v2782_v34  ;;  %v1833_v35 = vrot.slane %v1808_v59, 3 }
 0x141   : > { %v1314_v12 = vpop.permute.xlu1 %1313  ;;  %v3748_v22 = vsel %vm1823_vm5, %v1831_v24, %v1833_v35  ;;  %v4231_v24 = vld [vmem:[#allocation4_spill] sm:$0xff] }
 0x142   : > { %1333 = vst.msk [vmem:[#allocation2 + $0x20] sm:$0xf] %vm1324_vm1, %v1314_v12  ;;  %v1732_v58 = vrot.slane %v4231_v24, 7 }
 0x143   : > { %1397 = vst.msk [vmem:[#allocation2 + $0x20] sm:$0xf] %vm1388_vm3, %v1378_v29  ;;  %v1835_v29 = vrot.slane %v1809_v63, 3 }
 0x145   : > { %v1443_v31 = vpop.permute.xlu1 %1442  ;;  %v3751_v12 = vsel %vm1823_vm5, %v1833_v35, %v1835_v29  ;;  %v1863_v35 = vsub.s32 4, %v3767_v62 }
 0x146   : > { %1462 = vst.msk [vmem:[#allocation2 + $0x20] sm:$0xf] %vm1453_vm4, %v1443_v31  ;;  %v4223_v31 = vld [vmem:[#allocation17_spill] sm:$0xff] }
 0x14d   : > { %v2765_v3 = vld [vmem:[#allocation2 + $0x20] ss:$0 sps:$4 sm:$0xff]  }
 0x14e   : > { %2682 = vmatmul.mubr.msk.bf16.gmra.mrb[16].mxu0 %vm1531_vm6, %v2765_v3  ;;  %v4224_v3 = vfloor.f32 %v4223_v31 }
 0x150   : > { %v1728_v50 = vrot.slane %v4224_v3, 7  ;;  %v1876_v3 = vsub.s32 5, %v3767_v62 }
 0x152   : > { %v1729_v17 = vsel %vm1714_vm2, %v1726_v49, %v1728_v50  ;;  %v1731_v30 = vsel %vm1714_vm2, %v1728_v50, %v1730_v7  ;;  %v1733_v49 = vsel %vm1714_vm2, %v1730_v7, %v1732_v58  ;;  %v3818_v7 = vrot.slane %v1623_v52, %v1863_v35 }
 0x153   : > { %v1751_v26 = vadd.f32 %v1729_v17, %v4229_v61  ;;  %v1752_v15 = vadd.f32 %v1731_v30, %v4230_v32  ;;  %v1753_v6 = vadd.f32 %v1733_v49, %v3539_v0  ;;  %v3824_v17 = vrot.slane %v1623_v52, %v1876_v3 }
 0x155   : > { %v1800_v48 = vadd.f32 %v1778_v11, %v1751_v26  ;;  %v1801_v37 = vadd.f32 %v1780_v51, %v1752_v15  ;;  %v1802_v54 = vadd.f32 %v1782_v39, %v1753_v6  ;;  %v2784_v15 = vmov -1.0  }
 0x157   : > { %v1810_v38 = vmul.f32 0.03125, %v1800_v48  ;;  %v1811_v4 = vmul.f32 0.03125, %v1801_v37  ;;  %v1812_v0 = vmul.f32 0.03125, %v1802_v54 }
 0x159   : > { %v1837_v60 = vrot.slane %v1810_v38, 3  ;;  %v1839_v16 = vrot.slane %v1811_v4, 3  ;;  %v1841_v31 = vrot.slane %v1812_v0, 3 }
 0x15b   : > { %v3770_v18 = vsel %vm1823_vm5, %v1835_v29, %v1837_v60  ;;  %v3774_v19 = vsel %vm1823_vm5, %v1837_v60, %v1839_v16  ;;  %v3813_v13 = vsel %vm1823_vm5, %v1839_v16, %v1841_v31 }
 0x1a5   : > { %v1585_v44 = vpop.f32.mrb[0].mxu0 }
 0x1a6   : > { %v1628_v53 = vmul.f32 %v3785_v57, %v1585_v44  ;;  %v2667_v20 = vpop.f32.mrb[1].mxu0 }
 0x1a7   : > { %v1588_v21 = vpop.f32.mrb[2].mxu0 }
 0x1a8   : > { %v1641_v8 = vadd.f32 %v3791_v43, %v1628_v53  ;;  %v1629_v47 = vmul.f32 %v3785_v57, %v1588_v21  ;;  %v2668_v59 = vpop.f32.mrb[3].mxu0 }
 0x1aa   : > { %vm1650_vm7 = vcmp.gt.f32.partialorder %v1641_v8, 0.0  ;;  %v1663_v63 = vmul.f32 %v3799_v33, %v1641_v8  ;;  %v1642_v29 = vadd.f32 %v3791_v43, %v1629_v47 }
 0x1ac   : > { %v1672_v50 = vsel %vm1650_vm7, %v1641_v8, %v1663_v63  ;;  %vm1651_vm8 = vcmp.gt.f32.partialorder %v1642_v29, 0.0  ;;  %v1664_v28 = vmul.f32 %v3799_v33, %v1642_v29 }
 0x1ad   : > { %v1685_v46 = vadd.f32 %v3805_v40, %v1672_v50 }
 0x1ae   : > { %v1673_v56 = vsel %vm1651_vm8, %v1642_v29, %v1664_v28 }
 0x1af   : > { %v1852_v55 = vadd.f32 %v3697_v27, %v1685_v46  ;;  %v1686_v1 = vadd.f32 %v3805_v40, %v1673_v56 }
 0x1b1   : > { %v1865_v61 = vmul.f32 %v3818_v7, %v1852_v55  ;;  %v1853_v26 = vadd.f32 %v3700_v5, %v1686_v1 }
 0x1b3   : > { %v1866_v11 = vmul.f32 %v3818_v7, %v1853_v26  ;;  %v1878_v30 = vadd.f32 %v3824_v17, %v1865_v61 }
 0x1b5   : > { %v1879_v2 = vadd.f32 %v3824_v17, %v1866_v11  ;;  %vm1887_vm11 = vcmp.ge.f32.partialorder %v1878_v30, 0.0  ;;  %v2073_v48 = vmul.f32 8.0, %v1878_v30 }
 0x1b6   : > { %v1896_v51 = vsel %vm1887_vm11, 1.0, %v2784_v15 }
 0x1b7   : > { %vm1888_vm12 = vcmp.ge.f32.partialorder %v1879_v2, 0.0  ;;  %v2728_v27 = vround.rtne.f32 %v2073_v48  ;;  %v2074_v32 = vmul.f32 8.0, %v1879_v2 }
 0x1b8   : > { %v1897_v38 = vsel %vm1888_vm12, 1.0, %v2784_v15 }
 0x1b9   : > { %v1905_v37 = vpack.c.bf16 %v1897_v38, %v1896_v51  ;;  %v3833_v60 = vmul.f32 0.125, %v2728_v27  ;;  %v2729_v5 = vround.rtne.f32 %v2074_v32 }
 0x1bb   : > { %2688 = vmatmul.mubr.msk.bf16.vlgmr.msra.gmra.mrb[0].mxu1 %vm1911_vm13, %v1905_v37  ;;  %v2472_v4 = vclamps-f32 %v3833_v60, 1.0  ;;  %v3837_v16 = vmul.f32 0.125, %v2729_v5 }
 0x1bc   : > { %2691 = vmatprep.mubr.msk.bf16.mxu1 %vm2783_vm14, %v2782_v34 }
 0x1bd   : > { %2208 = vrot.lane.b32.xlu0 %v2472_v4, %s2777_s27  ;;  %v2473_v24 = vclamps-f32 %v3837_v16, 1.0 }
 0x1bf   : > { %2210 = vrot.lane.b32.xlu1 %v2473_v24, %s2777_s27 }
 0x1ca   : > { %v1593_v58 = vpop.f32.mrb[4].mxu0 }
 0x1cb   : > { %v1630_v52 = vmul.f32 %v3785_v57, %v1593_v58  ;;  %v2671_v14 = vpop.f32.mrb[5].mxu0 }
 0x1cc   : > { %v1596_v41 = vpop.f32.mrb[6].mxu0 }
 0x1cd   : > { %v1643_v36 = vadd.f32 %v3791_v43, %v1630_v52  ;;  %v1631_v49 = vmul.f32 %v3785_v57, %v1596_v41  ;;  %v2672_v6 = vpop.f32.mrb[7].mxu0 }
 0x1cf   : > { %vm1652_vm15 = vcmp.gt.f32.partialorder %v1643_v36, 0.0  ;;  %v1665_v44 = vmul.f32 %v3799_v33, %v1643_v36  ;;  %v1644_v39 = vadd.f32 %v3791_v43, %v1631_v49 }
 0x1d1   : > { %v1674_v53 = vsel %vm1652_vm15, %v1643_v36, %v1665_v44  ;;  %vm1653_vm0 = vcmp.gt.f32.partialorder %v1644_v39, 0.0  ;;  %v1666_v20 = vmul.f32 %v3799_v33, %v1644_v39 }
 0x1d2   : > { %v1687_v54 = vadd.f32 %v3805_v40, %v1674_v53 }
 0x1d3   : > { %v1675_v21 = vsel %vm1653_vm0, %v1644_v39, %v1666_v20 }
 0x1d4   : > { %v1854_v8 = vadd.f32 %v3728_v10, %v1687_v54  ;;  %v1688_v47 = vadd.f32 %v3805_v40, %v1675_v21 }
 0x1d6   : > { %v1867_v59 = vmul.f32 %v3818_v7, %v1854_v8  ;;  %v1855_v0 = vadd.f32 %v3731_v42, %v1688_v47 }
 0x1d8   : > { %v1868_v63 = vmul.f32 %v3818_v7, %v1855_v0  ;;  %v1880_v29 = vadd.f32 %v3824_v17, %v1867_v59 }
 0x1da   : > { %v1881_v31 = vadd.f32 %v3824_v17, %v1868_v63  ;;  %vm1889_vm1 = vcmp.ge.f32.partialorder %v1880_v29, 0.0  ;;  %v2075_v50 = vmul.f32 8.0, %v1880_v29 }
 0x1db   : > { %v1898_v56 = vsel %vm1889_vm1, 1.0, %v2784_v15 }
 0x1dc   : > { %vm1890_vm3 = vcmp.ge.f32.partialorder %v1881_v31, 0.0  ;;  %v2730_v28 = vround.rtne.f32 %v2075_v50  ;;  %v2076_v46 = vmul.f32 8.0, %v1881_v31 }
 0x1dd   : > { %v1899_v10 = vsel %vm1890_vm3, 1.0, %v2784_v15 }
 0x1de   : > { %v1906_v55 = vpack.c.bf16 %v1899_v10, %v1898_v56  ;;  %v3864_v1 = vmul.f32 0.125, %v2730_v28  ;;  %v2731_v61 = vround.rtne.f32 %v2076_v46 }
 0x1e0   : > { %2692 = vmatmul.mubr.msk.bf16.gmra.mrb[4].mxu1 %vm1911_vm13, %v1906_v55  ;;  %v2474_v42 = vclamps-f32 %v3864_v1, 1.0  ;;  %v3868_v26 = vmul.f32 0.125, %v2731_v61 }
 0x1e1   : > { %2695 = vmatprep.mubr.msk.bf16.mxu1 %vm2783_vm14, %v2782_v34 }
 0x1e2   : > { %2212 = vrot.lane.b32.xlu0 %v2474_v42, %s2777_s27  ;;  %v2475_v11 = vclamps-f32 %v3868_v26, 1.0 }
 0x1e4   : > { %2214 = vrot.lane.b32.xlu1 %v2475_v11, %s2777_s27 }
 0x1ec   : > { %v1601_v30 = vpop.f32.mrb[8].mxu0 }
 0x1ed   : > { %v1632_v2 = vmul.f32 %v3785_v57, %v1601_v30  ;;  %v2675_v48 = vpop.f32.mrb[9].mxu0 }
 0x1ee   : > { %v1604_v27 = vpop.f32.mrb[10].mxu0 }
 0x1ef   : > { %v1645_v32 = vadd.f32 %v3791_v43, %v1632_v2  ;;  %v1633_v51 = vmul.f32 %v3785_v57, %v1604_v27  ;;  %v2676_v38 = vpop.f32.mrb[11].mxu0 }
 0x1f1   : > { %vm1654_vm4 = vcmp.gt.f32.partialorder %v1645_v32, 0.0  ;;  %v1667_v37 = vmul.f32 %v3799_v33, %v1645_v32  ;;  %v1646_v5 = vadd.f32 %v3791_v43, %v1633_v51 }
 0x1f3   : > { %v1676_v58 = vsel %vm1654_vm4, %v1645_v32, %v1667_v37  ;;  %vm1655_vm6 = vcmp.gt.f32.partialorder %v1646_v5, 0.0  ;;  %v1668_v52 = vmul.f32 %v3799_v33, %v1646_v5 }
 0x1f4   : > { %v1689_v14 = vadd.f32 %v3805_v40, %v1676_v58 }
 0x1f5   : > { %v1677_v41 = vsel %vm1655_vm6, %v1646_v5, %v1668_v52 }
 0x1f6   : > { %v1856_v36 = vadd.f32 %v3748_v22, %v1689_v14  ;;  %v1690_v49 = vadd.f32 %v3805_v40, %v1677_v41 }
 0x1f8   : > { %v1869_v6 = vmul.f32 %v3818_v7, %v1856_v36  ;;  %v1857_v44 = vadd.f32 %v3751_v12, %v1690_v49 }
 0x1fa   : > { %v1870_v39 = vmul.f32 %v3818_v7, %v1857_v44  ;;  %v1882_v53 = vadd.f32 %v3824_v17, %v1869_v6 }
 0x1fc   : > { %v1883_v20 = vadd.f32 %v3824_v17, %v1870_v39  ;;  %vm1891_vm2 = vcmp.ge.f32.partialorder %v1882_v53, 0.0  ;;  %v2077_v54 = vmul.f32 8.0, %v1882_v53 }
 0x1fd   : > { %v1900_v47 = vsel %vm1891_vm2, 1.0, %v2784_v15 }
 0x1fe   : > { %vm1892_vm5 = vcmp.ge.f32.partialorder %v1883_v20, 0.0  ;;  %v2732_v21 = vround.rtne.f32 %v2077_v54  ;;  %v2078_v8 = vmul.f32 8.0, %v1883_v20 }
 0x1ff   : > { %v1901_v22 = vsel %vm1892_vm5, 1.0, %v2784_v15 }
 0x200   : > { %v1907_v59 = vpack.c.bf16 %v1901_v22, %v1900_v47  ;;  %v3895_v0 = vmul.f32 0.125, %v2732_v21  ;;  %v2733_v63 = vround.rtne.f32 %v2078_v8 }
 0x202   : > { %2696 = vmatmul.mubr.msk.bf16.gmra.mrb[8].mxu1 %vm1911_vm13, %v1907_v59  ;;  %v2476_v12 = vclamps-f32 %v3895_v0, 1.0  ;;  %v3899_v29 = vmul.f32 0.125, %v2733_v63 }
 0x203   : > { %2699 = vmatprep.mubr.msk.bf16.mxu1 %vm2783_vm14, %v2782_v34 }
 0x204   : > { %2216 = vrot.lane.b32.xlu0 %v2476_v12, %s2777_s27  ;;  %v2477_v31 = vclamps-f32 %v3899_v29, 1.0 }
 0x206   : > { %2218 = vrot.lane.b32.xlu1 %v2477_v31, %s2777_s27 }
 0x211   : > { %v1609_v50 = vpop.f32.mrb[12].mxu0 }
 0x212   : > { %v1634_v28 = vmul.f32 %v3785_v57, %v1609_v50  ;;  %v2679_v46 = vpop.f32.mrb[13].mxu0 }
 0x213   : > { %v1612_v56 = vpop.f32.mrb[14].mxu0 }
 0x214   : > { %v1647_v10 = vadd.f32 %v3791_v43, %v1634_v28  ;;  %v1635_v55 = vmul.f32 %v3785_v57, %v1612_v56  ;;  %v2680_v61 = vpop.f32.mrb[15].mxu0 }
 0x216   : > { %vm1656_vm7 = vcmp.gt.f32.partialorder %v1647_v10, 0.0  ;;  %v1669_v30 = vmul.f32 %v3799_v33, %v1647_v10  ;;  %v1648_v2 = vadd.f32 %v3791_v43, %v1635_v55 }
 0x218   : > { %v1678_v48 = vsel %vm1656_vm7, %v1647_v10, %v1669_v30  ;;  %vm1657_vm8 = vcmp.gt.f32.partialorder %v1648_v2, 0.0  ;;  %v1670_v27 = vmul.f32 %v3799_v33, %v1648_v2 }
 0x219   : > { %v1691_v32 = vadd.f32 %v3805_v40, %v1678_v48 }
 0x21a   : > { %v1679_v51 = vsel %vm1657_vm8, %v1648_v2, %v1670_v27 }
 0x21b   : > { %v1858_v38 = vadd.f32 %v3770_v18, %v1691_v32  ;;  %v1692_v37 = vadd.f32 %v3805_v40, %v1679_v51 }
 0x21d   : > { %v1871_v5 = vmul.f32 %v3818_v7, %v1858_v38  ;;  %v1859_v58 = vadd.f32 %v3774_v19, %v1692_v37 }
 0x21f   : > { %v1872_v52 = vmul.f32 %v3818_v7, %v1859_v58  ;;  %v1884_v14 = vadd.f32 %v3824_v17, %v1871_v5 }
 0x221   : > { %v1617_v41 = vpop.f32.mrb[16].mxu0  ;;  %v1885_v36 = vadd.f32 %v3824_v17, %v1872_v52  ;;  %vm1893_vm11 = vcmp.ge.f32.partialorder %v1884_v14, 0.0  ;;  %v2079_v49 = vmul.f32 8.0, %v1884_v14 }
 0x222   : > { %v1636_v6 = vmul.f32 %v3785_v57, %v1617_v41  ;;  %v2683_v44 = vpop.f32.mrb[17].mxu0  ;;  %v1902_v19 = vsel %vm1893_vm11, 1.0, %v2784_v15 }
 0x223   : > { %v1620_v39 = vpop.f32.mrb[18].mxu0  ;;  %vm1894_vm12 = vcmp.ge.f32.partialorder %v1885_v36, 0.0  ;;  %v2734_v18 = vround.rtne.f32 %v2079_v49  ;;  %v2080_v53 = vmul.f32 8.0, %v1885_v36 }
 0x224   : > { %v1649_v20 = vadd.f32 %v3791_v43, %v1636_v6  ;;  %v2684_v54 = vpop.f32.mrb[19].mxu0  ;;  %v1903_v21 = vsel %vm1894_vm12, 1.0, %v2784_v15 }
 0x225   : > { %v1908_v8 = vpack.c.bf16 %v1903_v21, %v1902_v19  ;;  %v3928_v47 = vmul.f32 0.125, %v2734_v18  ;;  %v2735_v22 = vround.rtne.f32 %v2080_v53 }
 0x226   : > { %vm1658_vm15 = vcmp.gt.f32.partialorder %v1649_v20, 0.0  ;;  %v1671_v59 = vmul.f32 %v3799_v33, %v1649_v20 }
 0x227   : > { %2700 = vmatmul.mubr.msk.bf16.gmra.mrb[12].mxu1 %vm1911_vm13, %v1908_v8  ;;  %v2478_v57 = vclamps-f32 %v3928_v47, 1.0  ;;  %v3933_v63 = vmul.f32 0.125, %v2735_v22 }
 0x228   : > { %v1680_v50 = vsel %vm1658_vm15, %v1649_v20, %v1671_v59  ;;  %2703 = vmatprep.mubr.msk.bf16.mxu1 %vm2783_vm14, %v2782_v34 }
 0x229   : > { %v1693_v43 = vadd.f32 %v3805_v40, %v1680_v50  ;;  %2220 = vrot.lane.b32.xlu0 %v2478_v57, %s2777_s27  ;;  %v2479_v28 = vclamps-f32 %v3933_v63, 1.0 }
 0x22b   : > { %v1860_v33 = vadd.f32 %v3813_v13, %v1693_v43  ;;  %2222 = vrot.lane.b32.xlu1 %v2479_v28, %s2777_s27 }
 0x22d   : > { %v1873_v46 = vmul.f32 %v3818_v7, %v1860_v33  ;;  %v2002_v7 = vld [vmem:[%s4122_s4] sm:$0xff] }
 0x22e   : > { %v3970_v48 = vrot.slane %v2002_v7, %v1661_v23  ;;  %v3983_v52 = vrot.slane %v2002_v7, %v1863_v35 }
 0x22f   : > { %v1886_v56 = vadd.f32 %v3824_v17, %v1873_v46  ;;  %v3961_v17 = vrot.slane %v2002_v7, %v1626_v45  ;;  %v3976_v45 = vrot.slane %v2002_v7, %v1683_v9  ;;  %v2209_v41 = vpop.permute.xlu0 %2208  ;;  %v3988_v9 = vrot.slane %v2002_v7, %v1876_v3 }
 0x231   : > { %vm1895_vm0 = vcmp.ge.f32.partialorder %v1886_v56, 0.0  ;;  %v2081_v34 = vmul.f32 8.0, %v1886_v56  ;;  %v2211_v39 = vpop.permute.xlu1 %2210 }
 0x232   : > { %v1904_v40 = vsel %vm1895_vm0, 1.0, %v2784_v15  ;;  %v3965_v15 = vrot.slane %v2002_v7, %v1639_v25 }
 0x233   : > { %v1909_v10 = vpack.c.bf16 %v1904_v40, %v1904_v40  ;;  %v2736_v55 = vround.rtne.f32 %v2081_v34 }
 0x235   : > { %2704 = vmatmul.mubr.msk.bf16.gmra.mrb[16].mxu1 %vm1911_vm13, %v1909_v10  ;;  %v3950_v61 = vmul.f32 0.125, %v2736_v55 }
 0x237   : > { %v2480_v13 = vclamps-f32 %v3950_v61, 1.0 }
 0x239   : > { %2224 = vrot.lane.b32.xlu0 %v2480_v13, %s2777_s27 }
 0x28e   : > { %v1964_v30 = vpop.f32.mrb[0].mxu1 }
 0x28f   : > { %v2007_v2 = vmul.f32 %v3961_v17, %v1964_v30  ;;  %v2689_v27 = vpop.f32.mrb[1].mxu1  ;;  %v2213_v30 = vpop.permute.xlu0 %2212 }
 0x290   : > { %v1967_v32 = vpop.f32.mrb[2].mxu1 }
 0x291   : > { %v2020_v51 = vadd.f32 %v3965_v15, %v2007_v2  ;;  %v2008_v38 = vmul.f32 %v3961_v17, %v1967_v32  ;;  %v2690_v37 = vpop.f32.mrb[3].mxu1 }
 0x293   : > { %vm2029_vm14 = vcmp.gt.f32.partialorder %v2020_v51, 0.0  ;;  %v2042_v25 = vmul.f32 %v3970_v48, %v2020_v51  ;;  %v2021_v5 = vadd.f32 %v3965_v15, %v2008_v38  ;;  %v2215_v38 = vpop.permute.xlu1 %2214 }
 0x295   : > { %v2051_v58 = vsel %vm2029_vm14, %v2020_v51, %v2042_v25  ;;  %vm2030_vm13 = vcmp.gt.f32.partialorder %v2021_v5, 0.0  ;;  %v2043_v23 = vmul.f32 %v3970_v48, %v2021_v5 }
 0x296   : > { %v2064_v14 = vadd.f32 %v3976_v45, %v2051_v58 }
 0x297   : > { %v2052_v36 = vsel %vm2030_vm13, %v2021_v5, %v2043_v23 }
 0x298   : > { %v2118_v49 = vadd.f32 %v2472_v4, %v2064_v14  ;;  %v2235_v6 = vadd.f32 %v2209_v41, %v2064_v14  ;;  %v2065_v44 = vadd.f32 %v3976_v45, %v2052_v36 }
 0x29a   : > { %v2131_v18 = vmul.f32 %v3983_v52, %v2118_v49  ;;  %v2244_v35 = vmul.f32 %v2235_v6, %v3983_v52  ;;  %v2119_v53 = vadd.f32 %v2473_v24, %v2065_v44  ;;  %v2236_v20 = vadd.f32 %v2211_v39, %v2065_v44 }
 0x29c   : > { %v2144_v62 = vadd.f32 %v3988_v9, %v2131_v18  ;;  %v2253_v3 = vadd.f32 %v2244_v35, %v3988_v9  ;;  %v2132_v60 = vmul.f32 %v3983_v52, %v2119_v53  ;;  %v2245_v4 = vmul.f32 %v2236_v20, %v3983_v52 }
 0x29e   : > { %v2541_v16 = vpack.c.bf16 %v2144_v62, %v2144_v62  ;;  %v2550_v24 = vpack.c.bf16 %v2253_v3, %v2253_v3  ;;  %v2145_v54 = vadd.f32 %v3988_v9, %v2132_v60  ;;  %v2254_v19 = vadd.f32 %v2245_v4, %v3988_v9 }
 0x2a0   : > { %2190 = vst.msk [vmem:[%s4005_s19] sm:$0xf] %vm598_vm9, %v2541_v16  ;;  %v2542_v21 = vpack.c.bf16 %v2145_v54, %v2145_v54  ;;  %v2551_v8 = vpack.c.bf16 %v2254_v19, %v2254_v19  ;;  %v2217_v54 = vpop.permute.xlu0 %2216 }
 0x2a1   : > { %2299 = vst.msk [vmem:[%s4005_s19] sm:$0xf] %vm757_vm10, %v2550_v24 }
 0x2a2   : > { %2191 = vst.msk [vmem:[%s4005_s19 + $0x4] sm:$0xf] %vm598_vm9, %v2542_v21 }
 0x2a3   : > { %2300 = vst.msk [vmem:[%s4005_s19 + $0x4] sm:$0xf] %vm757_vm10, %v2551_v8 }
 0x2b3   : > { %v1972_v22 = vpop.f32.mrb[4].mxu1 }
 0x2b4   : > { %v2009_v59 = vmul.f32 %v3961_v17, %v1972_v22  ;;  %v2693_v50 = vpop.f32.mrb[5].mxu1 }
 0x2b5   : > { %v1975_v43 = vpop.f32.mrb[6].mxu1 }
 0x2b6   : > { %v2022_v33 = vadd.f32 %v3965_v15, %v2009_v59  ;;  %v2010_v46 = vmul.f32 %v3961_v17, %v1975_v43  ;;  %v2694_v56 = vpop.f32.mrb[7].mxu1  ;;  %v2219_v59 = vpop.permute.xlu1 %2218 }
 0x2b8   : > { %vm2031_vm1 = vcmp.gt.f32.partialorder %v2022_v33, 0.0  ;;  %v2044_v34 = vmul.f32 %v3970_v48, %v2022_v33  ;;  %v2023_v40 = vadd.f32 %v3965_v15, %v2010_v46 }
 0x2ba   : > { %v2053_v10 = vsel %vm2031_vm1, %v2022_v33, %v2044_v34  ;;  %vm2032_vm3 = vcmp.gt.f32.partialorder %v2023_v40, 0.0  ;;  %v2045_v55 = vmul.f32 %v3970_v48, %v2023_v40 }
 0x2bb   : > { %v2066_v7 = vadd.f32 %v3976_v45, %v2053_v10 }
 0x2bc   : > { %v2054_v2 = vsel %vm2032_vm3, %v2023_v40, %v2045_v55 }
 0x2bd   : > { %v2120_v27 = vadd.f32 %v2474_v42, %v2066_v7  ;;  %v2237_v32 = vadd.f32 %v2213_v30, %v2066_v7  ;;  %v2067_v51 = vadd.f32 %v3976_v45, %v2054_v2 }
 0x2bf   : > { %v2133_v37 = vmul.f32 %v3983_v52, %v2120_v27  ;;  %v2246_v25 = vmul.f32 %v2237_v32, %v3983_v52  ;;  %v2121_v5 = vadd.f32 %v2475_v11, %v2067_v51  ;;  %v2238_v58 = vadd.f32 %v2215_v38, %v2067_v51 }
 0x2c1   : > { %v2146_v23 = vadd.f32 %v3988_v9, %v2133_v37  ;;  %v2255_v1 = vadd.f32 %v2246_v25, %v3988_v9  ;;  %v2134_v42 = vmul.f32 %v3983_v52, %v2121_v5  ;;  %v2247_v14 = vmul.f32 %v2238_v58, %v3983_v52 }
 0x2c3   : > { %v2543_v41 = vpack.c.bf16 %v2146_v23, %v2146_v23  ;;  %v2552_v36 = vpack.c.bf16 %v2255_v1, %v2255_v1  ;;  %v2147_v49 = vadd.f32 %v3988_v9, %v2134_v42  ;;  %v2256_v6 = vadd.f32 %v2247_v14, %v3988_v9  ;;  %v2221_v42 = vpop.permute.xlu0 %2220 }
 0x2c5   : > { %2192 = vst.msk [vmem:[%s4005_s19 + $0x8] sm:$0xf] %vm598_vm9, %v2543_v41  ;;  %v2544_v26 = vpack.c.bf16 %v2147_v49, %v2147_v49  ;;  %v2553_v44 = vpack.c.bf16 %v2256_v6, %v2256_v6  ;;  %v2223_v6 = vpop.permute.xlu1 %2222 }
 0x2c6   : > { %2301 = vst.msk [vmem:[%s4005_s19 + $0x8] sm:$0xf] %vm757_vm10, %v2552_v36 }
 0x2c7   : > { %2193 = vst.msk [vmem:[%s4005_s19 + $0xc] sm:$0xf] %vm598_vm9, %v2544_v26 }
 0x2c8   : > { %2302 = vst.msk [vmem:[%s4005_s19 + $0xc] sm:$0xf] %vm757_vm10, %v2553_v44 }
 0x2d5   : > { %v1980_v11 = vpop.f32.mrb[8].mxu1 }
 0x2d6   : > { %v2011_v39 = vmul.f32 %v3961_v17, %v1980_v11  ;;  %v2697_v18 = vpop.f32.mrb[9].mxu1 }
 0x2d7   : > { %v1983_v35 = vpop.f32.mrb[10].mxu1 }
 0x2d8   : > { %v2024_v53 = vadd.f32 %v3965_v15, %v2011_v39  ;;  %v2012_v20 = vmul.f32 %v3961_v17, %v1983_v35  ;;  %v2698_v62 = vpop.f32.mrb[11].mxu1 }
 0x2da   : > { %vm2033_vm4 = vcmp.gt.f32.partialorder %v2024_v53, 0.0  ;;  %v2046_v3 = vmul.f32 %v3970_v48, %v2024_v53  ;;  %v2025_v60 = vadd.f32 %v3965_v15, %v2012_v20 }
 0x2dc   : > { %v2055_v4 = vsel %vm2033_vm4, %v2024_v53, %v2046_v3  ;;  %vm2034_vm6 = vcmp.gt.f32.partialorder %v2025_v60, 0.0  ;;  %v2047_v16 = vmul.f32 %v3970_v48, %v2025_v60 }
 0x2dd   : > { %v2068_v24 = vadd.f32 %v3976_v45, %v2055_v4 }
 0x2de   : > { %v2056_v19 = vsel %vm2034_vm6, %v2025_v60, %v2047_v16 }
 0x2df   : > { %v2122_v21 = vadd.f32 %v2476_v12, %v2068_v24  ;;  %v2239_v8 = vadd.f32 %v2217_v54, %v2068_v24  ;;  %v2069_v22 = vadd.f32 %v3976_v45, %v2056_v19 }
 0x2e1   : > { %v2135_v50 = vmul.f32 %v3983_v52, %v2122_v21  ;;  %v2248_v43 = vmul.f32 %v2239_v8, %v3983_v52  ;;  %v2123_v33 = vadd.f32 %v2477_v31, %v2069_v22  ;;  %v2240_v46 = vadd.f32 %v2219_v59, %v2069_v22 }
 0x2e3   : > { %v2148_v56 = vadd.f32 %v3988_v9, %v2135_v50  ;;  %v2257_v0 = vadd.f32 %v2248_v43, %v3988_v9  ;;  %v2136_v12 = vmul.f32 %v3983_v52, %v2123_v33  ;;  %v2249_v34 = vmul.f32 %v2240_v46, %v3983_v52 }
 0x2e5   : > { %v2545_v40 = vpack.c.bf16 %v2148_v56, %v2148_v56  ;;  %v2554_v10 = vpack.c.bf16 %v2257_v0, %v2257_v0  ;;  %v2149_v55 = vadd.f32 %v3988_v9, %v2136_v12  ;;  %v2258_v7 = vadd.f32 %v2249_v34, %v3988_v9 }
 0x2e7   : > { %2194 = vst.msk [vmem:[%s4005_s19 + $0x10] sm:$0xf] %vm598_vm9, %v2545_v40  ;;  %v2546_v29 = vpack.c.bf16 %v2149_v55, %v2149_v55  ;;  %v2555_v30 = vpack.c.bf16 %v2258_v7, %v2258_v7 }
 0x2e8   : > { %2303 = vst.msk [vmem:[%s4005_s19 + $0x10] sm:$0xf] %vm757_vm10, %v2554_v10 }
 0x2e9   : > { %2195 = vst.msk [vmem:[%s4005_s19 + $0x14] sm:$0xf] %vm598_vm9, %v2546_v29 }
 0x2ea   : > { %2304 = vst.msk [vmem:[%s4005_s19 + $0x14] sm:$0xf] %vm757_vm10, %v2555_v30 }
 0x2fa   : > { %v1988_v31 = vpop.f32.mrb[12].mxu1 }
 0x2fb   : > { %v2013_v2 = vmul.f32 %v3961_v17, %v1988_v31  ;;  %v2701_v27 = vpop.f32.mrb[13].mxu1 }
 0x2fc   : > { %v1991_v32 = vpop.f32.mrb[14].mxu1 }
 0x2fd   : > { %v2026_v51 = vadd.f32 %v3965_v15, %v2013_v2  ;;  %v2014_v38 = vmul.f32 %v3961_v17, %v1991_v32  ;;  %v2702_v37 = vpop.f32.mrb[15].mxu1 }
 0x2ff   : > { %vm2035_vm2 = vcmp.gt.f32.partialorder %v2026_v51, 0.0  ;;  %v2048_v25 = vmul.f32 %v3970_v48, %v2026_v51  ;;  %v2027_v5 = vadd.f32 %v3965_v15, %v2014_v38 }
 0x301   : > { %v2057_v58 = vsel %vm2035_vm2, %v2026_v51, %v2048_v25  ;;  %vm2036_vm5 = vcmp.gt.f32.partialorder %v2027_v5, 0.0  ;;  %v2049_v23 = vmul.f32 %v3970_v48, %v2027_v5 }
 0x302   : > { %v2070_v1 = vadd.f32 %v3976_v45, %v2057_v58 }
 0x303   : > { %v2058_v14 = vsel %vm2036_vm5, %v2027_v5, %v2049_v23 }
 0x304   : > { %v2124_v41 = vadd.f32 %v2478_v57, %v2070_v1  ;;  %v2241_v36 = vadd.f32 %v2221_v42, %v2070_v1  ;;  %v2071_v49 = vadd.f32 %v3976_v45, %v2058_v14 }
 0x306   : > { %v2137_v26 = vmul.f32 %v3983_v52, %v2124_v41  ;;  %v2250_v44 = vmul.f32 %v2241_v36, %v3983_v52  ;;  %v2125_v11 = vadd.f32 %v2479_v28, %v2071_v49  ;;  %v2242_v39 = vadd.f32 %v2223_v6, %v2071_v49 }
 0x308   : > { %v2150_v18 = vadd.f32 %v3988_v9, %v2137_v26  ;;  %v2259_v35 = vadd.f32 %v2250_v44, %v3988_v9  ;;  %v2138_v47 = vmul.f32 %v3983_v52, %v2125_v11  ;;  %v2251_v57 = vmul.f32 %v2242_v39, %v3983_v52  ;;  %v1996_v53 = vpop.f32.mrb[16].mxu1 }
 0x309   : > { %v2015_v20 = vmul.f32 %v3961_v17, %v1996_v53  ;;  %v2705_v62 = vpop.f32.mrb[17].mxu1 }
 0x30a   : > { %v2547_v3 = vpack.c.bf16 %v2150_v18, %v2150_v18  ;;  %v2556_v63 = vpack.c.bf16 %v2259_v35, %v2259_v35  ;;  %v2151_v28 = vadd.f32 %v3988_v9, %v2138_v47  ;;  %v2260_v60 = vadd.f32 %v2251_v57, %v3988_v9  ;;  %v1999_v4 = vpop.f32.mrb[18].mxu1 }
 0x30b   : > { %v2028_v16 = vadd.f32 %v3965_v15, %v2015_v20  ;;  %v2706_v24 = vpop.f32.mrb[19].mxu1  ;;  %v2225_v15 = vpop.permute.xlu0 %2224 }
 0x30c   : > { %2196 = vst.msk [vmem:[%s4005_s19 + $0x18] sm:$0xf] %vm598_vm9, %v2547_v3  ;;  %v2548_v54 = vpack.c.bf16 %v2151_v28, %v2151_v28  ;;  %v2557_v19 = vpack.c.bf16 %v2260_v60, %v2260_v60 }
 0x30d   : > { %2305 = vst.msk [vmem:[%s4005_s19 + $0x18] sm:$0xf] %vm757_vm10, %v2556_v63  ;;  %vm2037_vm7 = vcmp.gt.f32.partialorder %v2028_v16, 0.0  ;;  %v2050_v17 = vmul.f32 %v3970_v48, %v2028_v16 }
 0x30e   : > { %2197 = vst.msk [vmem:[%s4005_s19 + $0x1c] sm:$0xf] %vm598_vm9, %v2548_v54 }
 0x30f   : > { %2306 = vst.msk [vmem:[%s4005_s19 + $0x1c] sm:$0xf] %vm757_vm10, %v2557_v19  ;;  %v2059_v21 = vsel %vm2037_vm7, %v2028_v16, %v2050_v17 }
 0x310   : > { %v2072_v8 = vadd.f32 %v3976_v45, %v2059_v21 }
 0x312   : > { %v2126_v22 = vadd.f32 %v2480_v13, %v2072_v8  ;;  %v2243_v59 = vadd.f32 %v2225_v15, %v2072_v8 }
 0x314   : > { %v2139_v50 = vmul.f32 %v3983_v52, %v2126_v22  ;;  %v2252_v43 = vmul.f32 %v2243_v59, %v3983_v52 }
 0x316   : > { %v2152_v33 = vadd.f32 %v3988_v9, %v2139_v50  ;;  %v2261_v48 = vadd.f32 %v2252_v43, %v3988_v9 }
 0x318   : > { %v2549_v46 = vpack.c.bf16 %v2152_v33, %v2152_v33  ;;  %v2558_v56 = vpack.c.bf16 %v2261_v48, %v2261_v48 }
 0x31a   : > { %2198 = vst.msk [vmem:[%s4005_s19 + $0x20] sm:$0xf] %vm598_vm9, %v2549_v46 }
 0x31b   : > { %2307 = vst.msk [vmem:[%s4005_s19 + $0x20] sm:$0xf] %vm757_vm10, %v2558_v56 }
 0x31c PF: > { %s15_s18 = sadd.s32 1, %s2772_s18  }
 0x31d   : > { %p12_p4 = scmp.ge.s32.totalorder %s15_s18, 4  }
 0x31f   :  { %14 = sbr.rel (!%p12_p4) target bundleno = 1 (0x1), region = 70 }

</bundles_post_ra>
